<compile_context>
chip_gen: v5e
topology: v5e:2x2
jax: 0.10.0
libtpu: 0.0.40
codegen_flags: <defaults>
</compile_context>

<pallas_src>
import functools

import jax
import jax.numpy as jnp
from jax.experimental import pallas as pl
from jax.experimental.pallas import tpu as pltpu

NEG_INF = -1e20


def _vmem_limit_bytes():
    """Generation-aware VMEM budget: leave headroom for double buffers."""
    try:
        cap = int(pltpu.get_tpu_info().vmem_capacity_bytes)
    except Exception:
        cap = 128 * 1024 * 1024
    return min(int(cap * 3 // 4), 100 * 1024 * 1024)


# ----------------------------------------------------------------------------
# Per-(batch, layer) kernel.  Activations live in a VMEM scratch across the
# layer axis; per-layer weights are streamed (double-buffered) by BlockSpecs.
# ----------------------------------------------------------------------------
def _decoder_layer_kernel(
        x_ref, enc_ref, tbias_ref, sbias_ref,
        sa_wqkv_ref, sa_wo_ref, sa_bo_ref, n0_g_ref, n0_b_ref,
        ca_wq_ref, ca_wkv_ref, ca_wo_ref, ca_bo_ref, n1_g_ref, n1_b_ref,
        w1_ref, b1_ref, w2_ref, b2_ref, n2_g_ref, n2_b_ref,
        wout_ref, bout_ref,
        out_ref,
        act_ref,
        *, heads, embed):
    E = embed
    hd = E // heads
    l = pl.program_id(1)
    last = pl.num_programs(1) - 1

    @pl.when(l == 0)
    def _init():
        # Fresh batch element: load the embedded tokens into the carry slab.
        act_ref[...] = x_ref[0].astype(jnp.float32)

    def attend(q, k, v, bias, wo, bo):
        """Multi-head attention core.  q/k/v are already projected (f32).

        The 1/sqrt(E) scale is folded into the Q weights; `bias` is an
        additive mask (0 kept / -1e20 masked).  Per-head contexts are
        lane-concatenated so the output projection is ONE (Lq,E)@(E,E) matmul.
        """
        outs = []
        for h in range(heads):                      # small static unroll
            sl = slice(h * hd, (h + 1) * hd)
            # scores[q, k] = sum_d Qh[q, d] * Kh[k, d]  (contraction on minor
            # dims expresses q @ k^T directly for the MXU).
            s = jax.lax.dot_general(q[:, sl], k[:, sl],
                                    (((1,), (1,)), ((), ())),
                                    preferred_element_type=jnp.float32)
            s = s + bias
            s = s - jnp.max(s, axis=-1, keepdims=True)
            p = jnp.exp(s)
            p = p * pl.reciprocal(jnp.sum(p, axis=-1, keepdims=True),
                                  approx=True)
            outs.append(jnp.dot(p, v[:, sl],
                                preferred_element_type=jnp.float32))
        ctx = outs[0] if heads == 1 else jnp.concatenate(outs, axis=-1)
        return jnp.dot(ctx.astype(jnp.bfloat16), wo,
                       preferred_element_type=jnp.float32) + bo

    def add_ln(a, b, g, beta):
        """LayerNorm(a + b) over the last dim, eps=1e-5, stats in f32."""
        y = a + b
        mu = jnp.mean(y, axis=-1, keepdims=True)
        var = jnp.mean(jnp.square(y - mu), axis=-1, keepdims=True)
        return (y - mu) * jax.lax.rsqrt(var + 1e-5) * g + beta

    x = act_ref[...]                 # (Lt, E) f32, carried across layers
    enc_bf = enc_ref[0]              # (Ls, E) bf16 (MXU input only)
    tbias = tbias_ref[0]             # (Lt, Lt) additive target-mask bias
    sbias = sbias_ref[0]             # (Lt, Ls) additive source-mask bias

    # --- DecoderBlock: masked self-attention, add & LayerNorm --------------
    qkv = jnp.dot(x.astype(jnp.bfloat16), sa_wqkv_ref[0],
                  preferred_element_type=jnp.float32)          # (Lt, 3E)
    attn = attend(qkv[:, :E], qkv[:, E:2 * E], qkv[:, 2 * E:],
                  tbias, sa_wo_ref[0], sa_bo_ref[0])
    query = add_ln(attn, x, n0_g_ref[0], n0_b_ref[0])

    # --- TransformerBlock: cross-attention (K/V = encoder), add & LN -------
    qc = jnp.dot(query.astype(jnp.bfloat16), ca_wq_ref[0],
                 preferred_element_type=jnp.float32)           # (Lt, E)
    kvc = jnp.dot(enc_bf, ca_wkv_ref[0],
                  preferred_element_type=jnp.float32)          # (Ls, 2E)
    cross = attend(qc, kvc[:, :E], kvc[:, E:],
                   sbias, ca_wo_ref[0], ca_bo_ref[0])
    h1 = add_ln(cross, query, n1_g_ref[0], n1_b_ref[0])

    # --- Feed-forward: Linear -> ReLU -> Linear, add & LN -------------------
    hid = jnp.maximum(
        jnp.dot(h1.astype(jnp.bfloat16), w1_ref[0],
                preferred_element_type=jnp.float32) + b1_ref[0], 0.0)
    ff = jnp.dot(hid.astype(jnp.bfloat16), w2_ref[0],
                 preferred_element_type=jnp.float32) + b2_ref[0]
    x_new = add_ln(ff, h1, n2_g_ref[0], n2_b_ref[0])
    act_ref[...] = x_new

    # --- Final vocab projection (lane-padded, fused) at the last layer -----
    @pl.when(l == last)
    def _logits():
        out_ref[0] = (jnp.dot(x_new.astype(jnp.bfloat16), wout_ref[...],
                              preferred_element_type=jnp.float32)
                      + bout_ref[...]).astype(out_ref.dtype)


# ----------------------------------------------------------------------------
# Wrapper: embedding glue, weight stacking (one-time transform), pallas_call
# ----------------------------------------------------------------------------
@functools.partial(jax.jit, static_argnums=(5,))
def decoder_forward(tokens, encoded, source_mask, target_mask, params, heads):
    N, Lt = tokens.shape
    Ls = encoded.shape[1]
    E = params["word_emb"].shape[1]
    V = params["wout"].shape[1]
    layers = params["layers"]
    L = len(layers)
    F = layers[0]["w1"].shape[1]
    Vp = max(128, ((V + 127) // 128) * 128)   # lane-dense logits

    # Embedding gathers in plain JAX (dropout = identity, eval mode).
    x = params["word_emb"][tokens] + params["pos_emb"][:Lt][None, :, :]  # (N,Lt,E)
    enc_bf = encoded.astype(jnp.bfloat16)     # only ever an MXU input

    # masks (N,1,Lq,Lk) 0/1 -> additive biases: 0 kept, -1e20 masked.
    tbias = jnp.where(target_mask[:, 0] == 0, NEG_INF, 0.0).astype(jnp.float32)
    sbias = jnp.where(source_mask[:, 0] == 0, NEG_INF, 0.0).astype(jnp.float32)

    # --- stack per-layer weights along a leading layer axis (bf16 for MXU) --
    # NOTE: in production this is a one-time parameter transform, not per-call.
    inv_scale = 1.0 / (E ** 0.5)   # fold softmax scale into the Q weights
    to_bf16 = lambda a: a.astype(jnp.bfloat16)

    def stack(fn):
        return jnp.stack([fn(lp) for lp in layers], axis=0)

    sa_wqkv = to_bf16(stack(lambda lp: jnp.concatenate(
        [lp["self_attn"]["wq"] * inv_scale,
         lp["self_attn"]["wk"], lp["self_attn"]["wv"]], axis=1)))     # (L,E,3E)
    sa_wo = to_bf16(stack(lambda lp: lp["self_attn"]["wo"]))          # (L,E,E)
    sa_bo = stack(lambda lp: lp["self_attn"]["bo"])                   # (L,1,E)
    n0_g = stack(lambda lp: lp["norm_g"]);  n0_b = stack(lambda lp: lp["norm_b"])
    ca_wq = to_bf16(stack(lambda lp: lp["cross_attn"]["wq"] * inv_scale))
    ca_wkv = to_bf16(stack(lambda lp: jnp.concatenate(
        [lp["cross_attn"]["wk"], lp["cross_attn"]["wv"]], axis=1)))   # (L,E,2E)
    ca_wo = to_bf16(stack(lambda lp: lp["cross_attn"]["wo"]))
    ca_bo = stack(lambda lp: lp["cross_attn"]["bo"])
    n1_g = stack(lambda lp: lp["norm1_g"]); n1_b = stack(lambda lp: lp["norm1_b"])
    w1 = to_bf16(stack(lambda lp: lp["w1"])); b1 = stack(lambda lp: lp["b1"])
    w2 = to_bf16(stack(lambda lp: lp["w2"])); b2 = stack(lambda lp: lp["b2"])
    n2_g = stack(lambda lp: lp["norm2_g"]); n2_b = stack(lambda lp: lp["norm2_b"])

    wout_p = jnp.pad(params["wout"].astype(jnp.bfloat16), ((0, 0), (0, Vp - V)))
    bout_p = jnp.pad(params["bout"], ((0, 0), (0, Vp - V)))

    args = (x, enc_bf, tbias, sbias,
            sa_wqkv, sa_wo, sa_bo, n0_g, n0_b,
            ca_wq, ca_wkv, ca_wo, ca_bo, n1_g, n1_b,
            w1, b1, w2, b2, n2_g, n2_b,
            wout_p, bout_p)

    # Per-layer weights: block index follows the layer grid axis -> streamed
    # and double-buffered.  Per-batch activations/masks: block index follows
    # the batch axis only -> fetched once per batch element.
    lw3 = lambda shp: pl.BlockSpec(shp, lambda n, l: (l, 0, 0))
    per_layer_specs = [
        lw3((1, E, 3 * E)), lw3((1, E, E)), lw3((1, 1, E)),
        lw3((1, 1, E)), lw3((1, 1, E)),
        lw3((1, E, E)), lw3((1, E, 2 * E)), lw3((1, E, E)), lw3((1, 1, E)),
        lw3((1, 1, E)), lw3((1, 1, E)),
        lw3((1, E, F)), lw3((1, 1, F)), lw3((1, F, E)), lw3((1, 1, E)),
        lw3((1, 1, E)), lw3((1, 1, E)),
    ]
    in_specs = [
        pl.BlockSpec((1, Lt, E), lambda n, l: (n, 0, 0)),    # x (embedded)
        pl.BlockSpec((1, Ls, E), lambda n, l: (n, 0, 0)),    # encoder output
        pl.BlockSpec((1, Lt, Lt), lambda n, l: (n, 0, 0)),   # target-mask bias
        pl.BlockSpec((1, Lt, Ls), lambda n, l: (n, 0, 0)),   # source-mask bias
    ] + per_layer_specs + [
        pl.BlockSpec((E, Vp), lambda n, l: (0, 0)),          # wout (resident)
        pl.BlockSpec((1, Vp), lambda n, l: (0, 0)),          # bout
    ]

    # Advisory cost estimate for XLA scheduling of surrounding ops.
    f_self = 2 * Lt * E * 3 * E + 4 * Lt * Lt * E + 2 * Lt * E * E
    f_cross = 2 * Lt * E * E + 2 * Ls * E * 2 * E + 4 * Lt * Ls * E + 2 * Lt * E * E
    f_ffn = 4 * Lt * E * F
    flops = N * (L * (f_self + f_cross + f_ffn) + 2 * Lt * E * Vp)
    transcendentals = N * L * heads * (Lt * Lt + Lt * Ls)
    bytes_accessed = (sum(int(a.size) * a.dtype.itemsize for a in args)
                      + N * Lt * Vp * 4)

    kern = functools.partial(_decoder_layer_kernel, heads=heads, embed=E)

    out_p = pl.pallas_call(
        kern,
        out_shape=jax.ShapeDtypeStruct((N, Lt, Vp), jnp.float32),
        grid_spec=pltpu.PrefetchScalarGridSpec(
            num_scalar_prefetch=0,
            grid=(N, L),
            in_specs=in_specs,
            out_specs=pl.BlockSpec((1, Lt, Vp), lambda n, l: (n, 0, 0)),
            scratch_shapes=[pltpu.VMEM((Lt, E), jnp.float32)],   # activation carry
        ),
        compiler_params=pltpu.CompilerParams(
            dimension_semantics=("parallel", "arbitrary"),
            vmem_limit_bytes=_vmem_limit_bytes()),
        cost_estimate=pl.CostEstimate(
            flops=int(flops), transcendentals=int(transcendentals),
            bytes_accessed=int(bytes_accessed)),
    )(*args)
    return out_p[:, :, :V]


# ----------------------------------------------------------------------------
# Parameter init (deterministic, synthetic)
# ----------------------------------------------------------------------------
def _attn_params(key, E):
    ks = jax.random.split(key, 4)
    return {
        "wv": jax.random.normal(ks[0], (E, E), jnp.float32) * 0.02,
        "wk": jax.random.normal(ks[1], (E, E), jnp.float32) * 0.02,
        "wq": jax.random.normal(ks[2], (E, E), jnp.float32) * 0.02,
        "wo": jax.random.normal(ks[3], (E, E), jnp.float32) * 0.02,
        "bo": jnp.zeros((1, E), jnp.float32),
    }


def init_params(key, vocab, E, num_layers, forward_expansion, max_length):
    keys = jax.random.split(key, 3 + num_layers)
    F = forward_expansion * E
    layers = []
    for li in range(num_layers):
        lk = jax.random.split(keys[3 + li], 4)
        layers.append({
            "self_attn": _attn_params(lk[0], E),
            "norm_g": jnp.ones((1, E), jnp.float32),
            "norm_b": jnp.zeros((1, E), jnp.float32),
            "cross_attn": _attn_params(lk[1], E),
            "norm1_g": jnp.ones((1, E), jnp.float32),
            "norm1_b": jnp.zeros((1, E), jnp.float32),
            "w1": jax.random.normal(lk[2], (E, F), jnp.float32) * 0.02,
            "b1": jnp.zeros((1, F), jnp.float32),
            "w2": jax.random.normal(lk[3], (F, E), jnp.float32) * 0.02,
            "b2": jnp.zeros((1, E), jnp.float32),
            "norm2_g": jnp.ones((1, E), jnp.float32),
            "norm2_b": jnp.zeros((1, E), jnp.float32),
        })
    return {
        "word_emb": jax.random.normal(keys[0], (vocab, E), jnp.float32) * 0.02,
        "pos_emb": jax.random.normal(keys[1], (max_length, E), jnp.float32) * 0.02,
        "wout": jax.random.normal(keys[2], (E, vocab), jnp.float32) * 0.02,
        "bout": jnp.zeros((1, vocab), jnp.float32),
        "layers": layers,
    }


# ----------------------------------------------------------------------------
# Pure-JAX f32 reference (mirrors the PyTorch module) for a sanity check
# ----------------------------------------------------------------------------
def _ref_attention(values, keys, query, mask, p, heads):
    N, q_len, E = query.shape
    k_len = keys.shape[1]
    hd = E // heads
    Vp = values @ p["wv"]
    Kp = keys @ p["wk"]
    Qp = query @ p["wq"]
    Vh = Vp.reshape(N, k_len, heads, hd)
    Kh = Kp.reshape(N, k_len, heads, hd)
    Qh = Qp.reshape(N, q_len, heads, hd)
    energy = jnp.einsum("nqhd,nkhd->nhqk", Qh, Kh)
    energy = jnp.where(mask == 0, NEG_INF, energy)
    attn = jax.nn.softmax(energy / (E ** 0.5), axis=3)
    out = jnp.einsum("nhqk,nkhd->nqhd", attn, Vh).reshape(N, q_len, E)
    return out @ p["wo"] + p["bo"]


def _ref_ln(x, g, b):
    mu = jnp.mean(x, axis=-1, keepdims=True)
    var = jnp.mean(jnp.square(x - mu), axis=-1, keepdims=True)
    return (x - mu) * jax.lax.rsqrt(var + 1e-5) * g + b


def _ref_decoder(tokens, encoded, source_mask, target_mask, params, heads):
    N, Lt = tokens.shape
    x = params["word_emb"][tokens] + params["pos_emb"][:Lt][None, :, :]
    for lp in params["layers"]:
        attn = _ref_attention(x, x, x, target_mask, lp["self_attn"], heads)
        query = _ref_ln(attn + x, lp["norm_g"], lp["norm_b"])
        cross = _ref_attention(encoded, encoded, query, source_mask,
                               lp["cross_attn"], heads)
        h = _ref_ln(cross + query, lp["norm1_g"], lp["norm1_b"])
        ff = jnp.maximum(h @ lp["w1"] + lp["b1"], 0.0) @ lp["w2"] + lp["b2"]
        x = _ref_ln(ff + h, lp["norm2_g"], lp["norm2_b"])
    return x @ params["wout"] + params["bout"]


# ----------------------------------------------------------------------------
if __name__ == "__main__":
    N = 2              # batch
    S_TGT = 8          # target (decoder) sequence length
    S_SRC = 16         # source (encoder) sequence length
    VOCAB = 64         # target_vocab_size
    EMBED = 32         # embed_size
    HEADS = 4
    LAYERS = 2
    FEXP = 4           # forward_expansion
    MAX_LEN = 32

    root = jax.random.PRNGKey(0)
    k_tok, k_enc, k_par = jax.random.split(root, 3)

    tokens = jax.random.randint(k_tok, (N, S_TGT), 0, VOCAB, dtype=jnp.int32)
    encoded = jax.random.normal(k_enc, (N, S_SRC, EMBED), jnp.float32)

    # causal target mask (N,1,S_TGT,S_TGT), full source mask (N,1,S_TGT,S_SRC)
    causal = jnp.tril(jnp.ones((S_TGT, S_TGT), jnp.float32))
    target_mask = jnp.broadcast_to(causal, (N, 1, S_TGT, S_TGT))
    source_mask = jnp.ones((N, 1, S_TGT, S_SRC), jnp.float32)

    params = init_params(k_par, VOCAB, EMBED, LAYERS, FEXP, MAX_LEN)

    out = decoder_forward(tokens, encoded, source_mask, target_mask, params, HEADS)
    jax.block_until_ready(out)
    assert out.shape == (N, S_TGT, VOCAB), out.shape

    ref = _ref_decoder(tokens, encoded, source_mask, target_mask, params, HEADS)
    max_err = float(jnp.max(jnp.abs(out - ref)))
    assert max_err < 5e-2, f"mismatch vs reference: {max_err}"
    print("KERNEL_OK")
</pallas_src>

<mosaic_0001>
module attributes {stable_mosaic.version = 11 : i64} {
  func.func @_decoder_layer_kernel(%arg0: i32, %arg1: i32, %arg2: memref<1x8x32xf32, #tpu.memory_space<vmem>>, %arg3: memref<1x16x32xbf16, #tpu.memory_space<vmem>>, %arg4: memref<1x8x8xf32, #tpu.memory_space<vmem>>, %arg5: memref<1x8x16xf32, #tpu.memory_space<vmem>>, %arg6: memref<1x32x96xbf16, #tpu.memory_space<vmem>>, %arg7: memref<1x32x32xbf16, #tpu.memory_space<vmem>>, %arg8: memref<1x1x32xf32, #tpu.memory_space<vmem>>, %arg9: memref<1x1x32xf32, #tpu.memory_space<vmem>>, %arg10: memref<1x1x32xf32, #tpu.memory_space<vmem>>, %arg11: memref<1x32x32xbf16, #tpu.memory_space<vmem>>, %arg12: memref<1x32x64xbf16, #tpu.memory_space<vmem>>, %arg13: memref<1x32x32xbf16, #tpu.memory_space<vmem>>, %arg14: memref<1x1x32xf32, #tpu.memory_space<vmem>>, %arg15: memref<1x1x32xf32, #tpu.memory_space<vmem>>, %arg16: memref<1x1x32xf32, #tpu.memory_space<vmem>>, %arg17: memref<1x32x128xbf16, #tpu.memory_space<vmem>>, %arg18: memref<1x1x128xf32, #tpu.memory_space<vmem>>, %arg19: memref<1x128x32xbf16, #tpu.memory_space<vmem>>, %arg20: memref<1x1x32xf32, #tpu.memory_space<vmem>>, %arg21: memref<1x1x32xf32, #tpu.memory_space<vmem>>, %arg22: memref<1x1x32xf32, #tpu.memory_space<vmem>>, %arg23: memref<32x128xbf16, #tpu.memory_space<vmem>>, %arg24: memref<1x128xf32, #tpu.memory_space<vmem>>, %arg25: memref<1x8x128xf32, #tpu.memory_space<vmem>>, %arg26: memref<8x32xf32, #tpu.memory_space<vmem>>) attributes {dimension_semantics = [#tpu.dimension_semantics<parallel>, #tpu.dimension_semantics<arbitrary>], iteration_bounds = array<i64: 2, 2>, scalar_prefetch = 0 : i64, scratch_operands = 1 : i64, tpu.core_type = #tpu.core_type<tc>, window_params = [{transform_indices = @transform_0, window_bounds = array<i64: 1, 8, 32>}, {transform_indices = @transform_1, window_bounds = array<i64: 1, 16, 32>}, {transform_indices = @transform_2, window_bounds = array<i64: 1, 8, 8>}, {transform_indices = @transform_3, window_bounds = array<i64: 1, 8, 16>}, {transform_indices = @transform_4, window_bounds = array<i64: 1, 32, 96>}, {transform_indices = @transform_5, window_bounds = array<i64: 1, 32, 32>}, {transform_indices = @transform_6, window_bounds = array<i64: 1, 1, 32>}, {transform_indices = @transform_7, window_bounds = array<i64: 1, 1, 32>}, {transform_indices = @transform_8, window_bounds = array<i64: 1, 1, 32>}, {transform_indices = @transform_9, window_bounds = array<i64: 1, 32, 32>}, {transform_indices = @transform_10, window_bounds = array<i64: 1, 32, 64>}, {transform_indices = @transform_11, window_bounds = array<i64: 1, 32, 32>}, {transform_indices = @transform_12, window_bounds = array<i64: 1, 1, 32>}, {transform_indices = @transform_13, window_bounds = array<i64: 1, 1, 32>}, {transform_indices = @transform_14, window_bounds = array<i64: 1, 1, 32>}, {transform_indices = @transform_15, window_bounds = array<i64: 1, 32, 128>}, {transform_indices = @transform_16, window_bounds = array<i64: 1, 1, 128>}, {transform_indices = @transform_17, window_bounds = array<i64: 1, 128, 32>}, {transform_indices = @transform_18, window_bounds = array<i64: 1, 1, 32>}, {transform_indices = @transform_19, window_bounds = array<i64: 1, 1, 32>}, {transform_indices = @transform_20, window_bounds = array<i64: 1, 1, 32>}, {pipeline_mode = #tpu.pipeline_mode<synchronous>, transform_indices = @transform_21, window_bounds = array<i64: 32, 128>}, {pipeline_mode = #tpu.pipeline_mode<synchronous>, transform_indices = @transform_22, window_bounds = array<i64: 1, 128>}, {transform_indices = @transform_23, window_bounds = array<i64: 1, 8, 128>}]} {
    %c0_i32 = arith.constant 0 : i32
    %0 = arith.cmpi eq, %arg1, %c0_i32 : i32
    %1 = arith.extui %0 : i1 to i32
    %c0_i32_0 = arith.constant 0 : i32
    %2 = arith.cmpi ne, %1, %c0_i32_0 : i32
    scf.if %2 {
      %c0_119 = arith.constant 0 : index
      %c0_120 = arith.constant 0 : index
      %c0_121 = arith.constant 0 : index
      %275 = vector.load %arg2[%c0_119, %c0_120, %c0_121] : memref<1x8x32xf32, #tpu.memory_space<vmem>>, vector<1x8x32xf32>
      %276 = vector.shape_cast %275 : vector<1x8x32xf32> to vector<8x32xf32>
      %c0_122 = arith.constant 0 : index
      %c0_123 = arith.constant 0 : index
      %277 = vector.load %arg26[%c0_122, %c0_123] : memref<8x32xf32, #tpu.memory_space<vmem>>, vector<8x32xf32>
      tpu.vector_store %arg26[%c0_122, %c0_123], %276 {strides = array<i32>} : memref<8x32xf32, #tpu.memory_space<vmem>>, vector<8x32xf32>,
    } else {
    }
    %c0 = arith.constant 0 : index
    %c0_1 = arith.constant 0 : index
    %3 = vector.load %arg26[%c0, %c0_1] : memref<8x32xf32, #tpu.memory_space<vmem>>, vector<8x32xf32>
    %c0_2 = arith.constant 0 : index
    %c0_3 = arith.constant 0 : index
    %c0_4 = arith.constant 0 : index
    %4 = vector.load %arg3[%c0_2, %c0_3, %c0_4] : memref<1x16x32xbf16, #tpu.memory_space<vmem>>, vector<1x16x32xbf16>
    %5 = vector.shape_cast %4 : vector<1x16x32xbf16> to vector<16x32xbf16>
    %c0_5 = arith.constant 0 : index
    %c0_6 = arith.constant 0 : index
    %c0_7 = arith.constant 0 : index
    %6 = vector.load %arg4[%c0_5, %c0_6, %c0_7] : memref<1x8x8xf32, #tpu.memory_space<vmem>>, vector<1x8x8xf32>
    %7 = vector.shape_cast %6 : vector<1x8x8xf32> to vector<8x8xf32>
    %c0_8 = arith.constant 0 : index
    %c0_9 = arith.constant 0 : index
    %c0_10 = arith.constant 0 : index
    %8 = vector.load %arg5[%c0_8, %c0_9, %c0_10] : memref<1x8x16xf32, #tpu.memory_space<vmem>>, vector<1x8x16xf32>
    %9 = vector.shape_cast %8 : vector<1x8x16xf32> to vector<8x16xf32>
    %10 = arith.truncf %3 : vector<8x32xf32> to vector<8x32xbf16>
    %c0_11 = arith.constant 0 : index
    %c0_12 = arith.constant 0 : index
    %c0_13 = arith.constant 0 : index
    %11 = vector.load %arg6[%c0_11, %c0_12, %c0_13] : memref<1x32x96xbf16, #tpu.memory_space<vmem>>, vector<1x32x96xbf16>
    %12 = vector.shape_cast %11 : vector<1x32x96xbf16> to vector<32x96xbf16>
    %cst = arith.constant dense<0.000000e+00> : vector<8x96xf32>
    %13 = tpu.matmul %10, %12, %cst {dimension_numbers = #tpu.dot_dimension_numbers<[1], [0], [0], [1], [0, 0, 1, 1], [], []>} : vector<8x32xbf16>, vector<32x96xbf16>, vector<8x96xf32> -> vector<8x96xf32>
    %14 = vector.extract_strided_slice %13 {offsets = [0, 0], sizes = [8, 32], strides = [1, 1]} : vector<8x96xf32> to vector<8x32xf32>
    %15 = vector.extract_strided_slice %13 {offsets = [0, 32], sizes = [8, 32], strides = [1, 1]} : vector<8x96xf32> to vector<8x32xf32>
    %16 = vector.extract_strided_slice %13 {offsets = [0, 64], sizes = [8, 32], strides = [1, 1]} : vector<8x96xf32> to vector<8x32xf32>
    %c0_14 = arith.constant 0 : index
    %c0_15 = arith.constant 0 : index
    %c0_16 = arith.constant 0 : index
    %17 = vector.load %arg7[%c0_14, %c0_15, %c0_16] : memref<1x32x32xbf16, #tpu.memory_space<vmem>>, vector<1x32x32xbf16>
    %18 = vector.shape_cast %17 : vector<1x32x32xbf16> to vector<32x32xbf16>
    %c0_17 = arith.constant 0 : index
    %c0_18 = arith.constant 0 : index
    %c0_19 = arith.constant 0 : index
    %19 = vector.load %arg8[%c0_17, %c0_18, %c0_19] : memref<1x1x32xf32, #tpu.memory_space<vmem>>, vector<1x1x32xf32>
    %20 = vector.shape_cast %19 : vector<1x1x32xf32> to vector<1x32xf32>
    %21 = vector.extract_strided_slice %14 {offsets = [0, 0], sizes = [8, 8], strides = [1, 1]} : vector<8x32xf32> to vector<8x8xf32>
    %22 = vector.extract_strided_slice %15 {offsets = [0, 0], sizes = [8, 8], strides = [1, 1]} : vector<8x32xf32> to vector<8x8xf32>
    %cst_20 = arith.constant dense<0.000000e+00> : vector<8x8xf32>
    %23 = tpu.matmul %21, %22, %cst_20 {dimension_numbers = #tpu.dot_dimension_numbers<[1], [1], [0], [0], [0, 0, 1, 0], [], []>} : vector<8x8xf32>, vector<8x8xf32>, vector<8x8xf32> -> vector<8x8xf32>
    %24 = arith.addf %23, %7 : vector<8x8xf32>
    %cst_21 = arith.constant dense<0xFF800000> : vector<8xf32>
    %25 = vector.multi_reduction <maximumf>, %24, %cst_21 [1] : vector<8x8xf32> to vector<8xf32>
    %26 = vector.shape_cast %25 : vector<8xf32> to vector<8x1xf32>
    %27 = vector.broadcast %26 : vector<8x1xf32> to vector<8x8xf32>
    %28 = arith.subf %24, %27 : vector<8x8xf32>
    %29 = math.exp %28 : vector<8x8xf32>
    %cst_22 = arith.constant dense<0.000000e+00> : vector<8xf32>
    %30 = vector.multi_reduction <add>, %29, %cst_22 [1] : vector<8x8xf32> to vector<8xf32>
    %31 = vector.shape_cast %30 : vector<8xf32> to vector<8x1xf32>
    %32 = tpu.reciprocal %31 {approx = true} : vector<8x1xf32> -> vector<8x1xf32>
    %33 = vector.broadcast %32 : vector<8x1xf32> to vector<8x8xf32>
    %34 = arith.mulf %29, %33 : vector<8x8xf32>
    %35 = vector.extract_strided_slice %16 {offsets = [0, 0], sizes = [8, 8], strides = [1, 1]} : vector<8x32xf32> to vector<8x8xf32>
    %cst_23 = arith.constant dense<0.000000e+00> : vector<8x8xf32>
    %36 = tpu.matmul %34, %35, %cst_23 {dimension_numbers = #tpu.dot_dimension_numbers<[1], [0], [0], [1], [0, 0, 1, 1], [], []>} : vector<8x8xf32>, vector<8x8xf32>, vector<8x8xf32> -> vector<8x8xf32>
    %37 = vector.extract_strided_slice %14 {offsets = [0, 8], sizes = [8, 8], strides = [1, 1]} : vector<8x32xf32> to vector<8x8xf32>
    %38 = vector.extract_strided_slice %15 {offsets = [0, 8], sizes = [8, 8], strides = [1, 1]} : vector<8x32xf32> to vector<8x8xf32>
    %cst_24 = arith.constant dense<0.000000e+00> : vector<8x8xf32>
    %39 = tpu.matmul %37, %38, %cst_24 {dimension_numbers = #tpu.dot_dimension_numbers<[1], [1], [0], [0], [0, 0, 1, 0], [], []>} : vector<8x8xf32>, vector<8x8xf32>, vector<8x8xf32> -> vector<8x8xf32>
    %40 = arith.addf %39, %7 : vector<8x8xf32>
    %cst_25 = arith.constant dense<0xFF800000> : vector<8xf32>
    %41 = vector.multi_reduction <maximumf>, %40, %cst_25 [1] : vector<8x8xf32> to vector<8xf32>
    %42 = vector.shape_cast %41 : vector<8xf32> to vector<8x1xf32>
    %43 = vector.broadcast %42 : vector<8x1xf32> to vector<8x8xf32>
    %44 = arith.subf %40, %43 : vector<8x8xf32>
    %45 = math.exp %44 : vector<8x8xf32>
    %cst_26 = arith.constant dense<0.000000e+00> : vector<8xf32>
    %46 = vector.multi_reduction <add>, %45, %cst_26 [1] : vector<8x8xf32> to vector<8xf32>
    %47 = vector.shape_cast %46 : vector<8xf32> to vector<8x1xf32>
    %48 = tpu.reciprocal %47 {approx = true} : vector<8x1xf32> -> vector<8x1xf32>
    %49 = vector.broadcast %48 : vector<8x1xf32> to vector<8x8xf32>
    %50 = arith.mulf %45, %49 : vector<8x8xf32>
    %51 = vector.extract_strided_slice %16 {offsets = [0, 8], sizes = [8, 8], strides = [1, 1]} : vector<8x32xf32> to vector<8x8xf32>
    %cst_27 = arith.constant dense<0.000000e+00> : vector<8x8xf32>
    %52 = tpu.matmul %50, %51, %cst_27 {dimension_numbers = #tpu.dot_dimension_numbers<[1], [0], [0], [1], [0, 0, 1, 1], [], []>} : vector<8x8xf32>, vector<8x8xf32>, vector<8x8xf32> -> vector<8x8xf32>
    %53 = vector.extract_strided_slice %14 {offsets = [0, 16], sizes = [8, 8], strides = [1, 1]} : vector<8x32xf32> to vector<8x8xf32>
    %54 = vector.extract_strided_slice %15 {offsets = [0, 16], sizes = [8, 8], strides = [1, 1]} : vector<8x32xf32> to vector<8x8xf32>
    %cst_28 = arith.constant dense<0.000000e+00> : vector<8x8xf32>
    %55 = tpu.matmul %53, %54, %cst_28 {dimension_numbers = #tpu.dot_dimension_numbers<[1], [1], [0], [0], [0, 0, 1, 0], [], []>} : vector<8x8xf32>, vector<8x8xf32>, vector<8x8xf32> -> vector<8x8xf32>
    %56 = arith.addf %55, %7 : vector<8x8xf32>
    %cst_29 = arith.constant dense<0xFF800000> : vector<8xf32>
    %57 = vector.multi_reduction <maximumf>, %56, %cst_29 [1] : vector<8x8xf32> to vector<8xf32>
    %58 = vector.shape_cast %57 : vector<8xf32> to vector<8x1xf32>
    %59 = vector.broadcast %58 : vector<8x1xf32> to vector<8x8xf32>
    %60 = arith.subf %56, %59 : vector<8x8xf32>
    %61 = math.exp %60 : vector<8x8xf32>
    %cst_30 = arith.constant dense<0.000000e+00> : vector<8xf32>
    %62 = vector.multi_reduction <add>, %61, %cst_30 [1] : vector<8x8xf32> to vector<8xf32>
    %63 = vector.shape_cast %62 : vector<8xf32> to vector<8x1xf32>
    %64 = tpu.reciprocal %63 {approx = true} : vector<8x1xf32> -> vector<8x1xf32>
    %65 = vector.broadcast %64 : vector<8x1xf32> to vector<8x8xf32>
    %66 = arith.mulf %61, %65 : vector<8x8xf32>
    %67 = vector.extract_strided_slice %16 {offsets = [0, 16], sizes = [8, 8], strides = [1, 1]} : vector<8x32xf32> to vector<8x8xf32>
    %cst_31 = arith.constant dense<0.000000e+00> : vector<8x8xf32>
    %68 = tpu.matmul %66, %67, %cst_31 {dimension_numbers = #tpu.dot_dimension_numbers<[1], [0], [0], [1], [0, 0, 1, 1], [], []>} : vector<8x8xf32>, vector<8x8xf32>, vector<8x8xf32> -> vector<8x8xf32>
    %69 = vector.extract_strided_slice %14 {offsets = [0, 24], sizes = [8, 8], strides = [1, 1]} : vector<8x32xf32> to vector<8x8xf32>
    %70 = vector.extract_strided_slice %15 {offsets = [0, 24], sizes = [8, 8], strides = [1, 1]} : vector<8x32xf32> to vector<8x8xf32>
    %cst_32 = arith.constant dense<0.000000e+00> : vector<8x8xf32>
    %71 = tpu.matmul %69, %70, %cst_32 {dimension_numbers = #tpu.dot_dimension_numbers<[1], [1], [0], [0], [0, 0, 1, 0], [], []>} : vector<8x8xf32>, vector<8x8xf32>, vector<8x8xf32> -> vector<8x8xf32>
    %72 = arith.addf %71, %7 : vector<8x8xf32>
    %cst_33 = arith.constant dense<0xFF800000> : vector<8xf32>
    %73 = vector.multi_reduction <maximumf>, %72, %cst_33 [1] : vector<8x8xf32> to vector<8xf32>
    %74 = vector.shape_cast %73 : vector<8xf32> to vector<8x1xf32>
    %75 = vector.broadcast %74 : vector<8x1xf32> to vector<8x8xf32>
    %76 = arith.subf %72, %75 : vector<8x8xf32>
    %77 = math.exp %76 : vector<8x8xf32>
    %cst_34 = arith.constant dense<0.000000e+00> : vector<8xf32>
    %78 = vector.multi_reduction <add>, %77, %cst_34 [1] : vector<8x8xf32> to vector<8xf32>
    %79 = vector.shape_cast %78 : vector<8xf32> to vector<8x1xf32>
    %80 = tpu.reciprocal %79 {approx = true} : vector<8x1xf32> -> vector<8x1xf32>
    %81 = vector.broadcast %80 : vector<8x1xf32> to vector<8x8xf32>
    %82 = arith.mulf %77, %81 : vector<8x8xf32>
    %83 = vector.extract_strided_slice %16 {offsets = [0, 24], sizes = [8, 8], strides = [1, 1]} : vector<8x32xf32> to vector<8x8xf32>
    %cst_35 = arith.constant dense<0.000000e+00> : vector<8x8xf32>
    %84 = tpu.matmul %82, %83, %cst_35 {dimension_numbers = #tpu.dot_dimension_numbers<[1], [0], [0], [1], [0, 0, 1, 1], [], []>} : vector<8x8xf32>, vector<8x8xf32>, vector<8x8xf32> -> vector<8x8xf32>
    %85 = tpu.concatenate %36, %52, %68, %84 in 1 : vector<8x8xf32>, vector<8x8xf32>, vector<8x8xf32>, vector<8x8xf32> -> vector<8x32xf32>
    %86 = arith.truncf %85 : vector<8x32xf32> to vector<8x32xbf16>
    %cst_36 = arith.constant dense<0.000000e+00> : vector<8x32xf32>
    %87 = tpu.matmul %86, %18, %cst_36 {dimension_numbers = #tpu.dot_dimension_numbers<[1], [0], [0], [1], [0, 0, 1, 1], [], []>} : vector<8x32xbf16>, vector<32x32xbf16>, vector<8x32xf32> -> vector<8x32xf32>
    %88 = vector.broadcast %20 : vector<1x32xf32> to vector<8x32xf32>
    %89 = arith.addf %87, %88 : vector<8x32xf32>
    %c0_37 = arith.constant 0 : index
    %c0_38 = arith.constant 0 : index
    %c0_39 = arith.constant 0 : index
    %90 = vector.load %arg9[%c0_37, %c0_38, %c0_39] : memref<1x1x32xf32, #tpu.memory_space<vmem>>, vector<1x1x32xf32>
    %91 = vector.shape_cast %90 : vector<1x1x32xf32> to vector<1x32xf32>
    %c0_40 = arith.constant 0 : index
    %c0_41 = arith.constant 0 : index
    %c0_42 = arith.constant 0 : index
    %92 = vector.load %arg10[%c0_40, %c0_41, %c0_42] : memref<1x1x32xf32, #tpu.memory_space<vmem>>, vector<1x1x32xf32>
    %93 = vector.shape_cast %92 : vector<1x1x32xf32> to vector<1x32xf32>
    %94 = arith.addf %89, %3 : vector<8x32xf32>
    %cst_43 = arith.constant dense<0.000000e+00> : vector<8xf32>
    %95 = vector.multi_reduction <add>, %94, %cst_43 [1] : vector<8x32xf32> to vector<8xf32>
    %96 = vector.shape_cast %95 : vector<8xf32> to vector<8x1xf32>
    %cst_44 = arith.constant 3.200000e+01 : f32
    %97 = vector.broadcast %cst_44 : f32 to vector<8x1xf32>
    %98 = arith.divf %96, %97 : vector<8x1xf32>
    %99 = vector.broadcast %98 : vector<8x1xf32> to vector<8x32xf32>
    %100 = arith.subf %94, %99 : vector<8x32xf32>
    %101 = arith.mulf %100, %100 : vector<8x32xf32>
    %cst_45 = arith.constant dense<0.000000e+00> : vector<8xf32>
    %102 = vector.multi_reduction <add>, %101, %cst_45 [1] : vector<8x32xf32> to vector<8xf32>
    %103 = vector.shape_cast %102 : vector<8xf32> to vector<8x1xf32>
    %cst_46 = arith.constant 3.200000e+01 : f32
    %104 = vector.broadcast %cst_46 : f32 to vector<8x1xf32>
    %105 = arith.divf %103, %104 : vector<8x1xf32>
    %106 = vector.broadcast %98 : vector<8x1xf32> to vector<8x32xf32>
    %107 = arith.subf %94, %106 : vector<8x32xf32>
    %cst_47 = arith.constant 9.99999974E-6 : f32
    %108 = vector.broadcast %cst_47 : f32 to vector<8x1xf32>
    %109 = arith.addf %105, %108 : vector<8x1xf32>
    %110 = math.rsqrt %109 : vector<8x1xf32>
    %111 = vector.broadcast %110 : vector<8x1xf32> to vector<8x32xf32>
    %112 = arith.mulf %107, %111 : vector<8x32xf32>
    %113 = vector.broadcast %91 : vector<1x32xf32> to vector<8x32xf32>
    %114 = arith.mulf %112, %113 : vector<8x32xf32>
    %115 = vector.broadcast %93 : vector<1x32xf32> to vector<8x32xf32>
    %116 = arith.addf %114, %115 : vector<8x32xf32>
    %117 = arith.truncf %116 : vector<8x32xf32> to vector<8x32xbf16>
    %c0_48 = arith.constant 0 : index
    %c0_49 = arith.constant 0 : index
    %c0_50 = arith.constant 0 : index
    %118 = vector.load %arg11[%c0_48, %c0_49, %c0_50] : memref<1x32x32xbf16, #tpu.memory_space<vmem>>, vector<1x32x32xbf16>
    %119 = vector.shape_cast %118 : vector<1x32x32xbf16> to vector<32x32xbf16>
    %cst_51 = arith.constant dense<0.000000e+00> : vector<8x32xf32>
    %120 = tpu.matmul %117, %119, %cst_51 {dimension_numbers = #tpu.dot_dimension_numbers<[1], [0], [0], [1], [0, 0, 1, 1], [], []>} : vector<8x32xbf16>, vector<32x32xbf16>, vector<8x32xf32> -> vector<8x32xf32>
    %c0_52 = arith.constant 0 : index
    %c0_53 = arith.constant 0 : index
    %c0_54 = arith.constant 0 : index
    %121 = vector.load %arg12[%c0_52, %c0_53, %c0_54] : memref<1x32x64xbf16, #tpu.memory_space<vmem>>, vector<1x32x64xbf16>
    %122 = vector.shape_cast %121 : vector<1x32x64xbf16> to vector<32x64xbf16>
    %cst_55 = arith.constant dense<0.000000e+00> : vector<16x64xf32>
    %123 = tpu.matmul %5, %122, %cst_55 {dimension_numbers = #tpu.dot_dimension_numbers<[1], [0], [0], [1], [0, 0, 1, 1], [], []>} : vector<16x32xbf16>, vector<32x64xbf16>, vector<16x64xf32> -> vector<16x64xf32>
    %124 = vector.extract_strided_slice %123 {offsets = [0, 0], sizes = [16, 32], strides = [1, 1]} : vector<16x64xf32> to vector<16x32xf32>
    %125 = vector.extract_strided_slice %123 {offsets = [0, 32], sizes = [16, 32], strides = [1, 1]} : vector<16x64xf32> to vector<16x32xf32>
    %c0_56 = arith.constant 0 : index
    %c0_57 = arith.constant 0 : index
    %c0_58 = arith.constant 0 : index
    %126 = vector.load %arg13[%c0_56, %c0_57, %c0_58] : memref<1x32x32xbf16, #tpu.memory_space<vmem>>, vector<1x32x32xbf16>
    %127 = vector.shape_cast %126 : vector<1x32x32xbf16> to vector<32x32xbf16>
    %c0_59 = arith.constant 0 : index
    %c0_60 = arith.constant 0 : index
    %c0_61 = arith.constant 0 : index
    %128 = vector.load %arg14[%c0_59, %c0_60, %c0_61] : memref<1x1x32xf32, #tpu.memory_space<vmem>>, vector<1x1x32xf32>
    %129 = vector.shape_cast %128 : vector<1x1x32xf32> to vector<1x32xf32>
    %130 = vector.extract_strided_slice %120 {offsets = [0, 0], sizes = [8, 8], strides = [1, 1]} : vector<8x32xf32> to vector<8x8xf32>
    %131 = vector.extract_strided_slice %124 {offsets = [0, 0], sizes = [16, 8], strides = [1, 1]} : vector<16x32xf32> to vector<16x8xf32>
    %cst_62 = arith.constant dense<0.000000e+00> : vector<8x16xf32>
    %132 = tpu.matmul %130, %131, %cst_62 {dimension_numbers = #tpu.dot_dimension_numbers<[1], [1], [0], [0], [0, 0, 1, 0], [], []>} : vector<8x8xf32>, vector<16x8xf32>, vector<8x16xf32> -> vector<8x16xf32>
    %133 = arith.addf %132, %9 : vector<8x16xf32>
    %cst_63 = arith.constant dense<0xFF800000> : vector<8xf32>
    %134 = vector.multi_reduction <maximumf>, %133, %cst_63 [1] : vector<8x16xf32> to vector<8xf32>
    %135 = vector.shape_cast %134 : vector<8xf32> to vector<8x1xf32>
    %136 = vector.broadcast %135 : vector<8x1xf32> to vector<8x16xf32>
    %137 = arith.subf %133, %136 : vector<8x16xf32>
    %138 = math.exp %137 : vector<8x16xf32>
    %cst_64 = arith.constant dense<0.000000e+00> : vector<8xf32>
    %139 = vector.multi_reduction <add>, %138, %cst_64 [1] : vector<8x16xf32> to vector<8xf32>
    %140 = vector.shape_cast %139 : vector<8xf32> to vector<8x1xf32>
    %141 = tpu.reciprocal %140 {approx = true} : vector<8x1xf32> -> vector<8x1xf32>
    %142 = vector.broadcast %141 : vector<8x1xf32> to vector<8x16xf32>
    %143 = arith.mulf %138, %142 : vector<8x16xf32>
    %144 = vector.extract_strided_slice %125 {offsets = [0, 0], sizes = [16, 8], strides = [1, 1]} : vector<16x32xf32> to vector<16x8xf32>
    %cst_65 = arith.constant dense<0.000000e+00> : vector<8x8xf32>
    %145 = tpu.matmul %143, %144, %cst_65 {dimension_numbers = #tpu.dot_dimension_numbers<[1], [0], [0], [1], [0, 0, 1, 1], [], []>} : vector<8x16xf32>, vector<16x8xf32>, vector<8x8xf32> -> vector<8x8xf32>
    %146 = vector.extract_strided_slice %120 {offsets = [0, 8], sizes = [8, 8], strides = [1, 1]} : vector<8x32xf32> to vector<8x8xf32>
    %147 = vector.extract_strided_slice %124 {offsets = [0, 8], sizes = [16, 8], strides = [1, 1]} : vector<16x32xf32> to vector<16x8xf32>
    %cst_66 = arith.constant dense<0.000000e+00> : vector<8x16xf32>
    %148 = tpu.matmul %146, %147, %cst_66 {dimension_numbers = #tpu.dot_dimension_numbers<[1], [1], [0], [0], [0, 0, 1, 0], [], []>} : vector<8x8xf32>, vector<16x8xf32>, vector<8x16xf32> -> vector<8x16xf32>
    %149 = arith.addf %148, %9 : vector<8x16xf32>
    %cst_67 = arith.constant dense<0xFF800000> : vector<8xf32>
    %150 = vector.multi_reduction <maximumf>, %149, %cst_67 [1] : vector<8x16xf32> to vector<8xf32>
    %151 = vector.shape_cast %150 : vector<8xf32> to vector<8x1xf32>
    %152 = vector.broadcast %151 : vector<8x1xf32> to vector<8x16xf32>
    %153 = arith.subf %149, %152 : vector<8x16xf32>
    %154 = math.exp %153 : vector<8x16xf32>
    %cst_68 = arith.constant dense<0.000000e+00> : vector<8xf32>
    %155 = vector.multi_reduction <add>, %154, %cst_68 [1] : vector<8x16xf32> to vector<8xf32>
    %156 = vector.shape_cast %155 : vector<8xf32> to vector<8x1xf32>
    %157 = tpu.reciprocal %156 {approx = true} : vector<8x1xf32> -> vector<8x1xf32>
    %158 = vector.broadcast %157 : vector<8x1xf32> to vector<8x16xf32>
    %159 = arith.mulf %154, %158 : vector<8x16xf32>
    %160 = vector.extract_strided_slice %125 {offsets = [0, 8], sizes = [16, 8], strides = [1, 1]} : vector<16x32xf32> to vector<16x8xf32>
    %cst_69 = arith.constant dense<0.000000e+00> : vector<8x8xf32>
    %161 = tpu.matmul %159, %160, %cst_69 {dimension_numbers = #tpu.dot_dimension_numbers<[1], [0], [0], [1], [0, 0, 1, 1], [], []>} : vector<8x16xf32>, vector<16x8xf32>, vector<8x8xf32> -> vector<8x8xf32>
    %162 = vector.extract_strided_slice %120 {offsets = [0, 16], sizes = [8, 8], strides = [1, 1]} : vector<8x32xf32> to vector<8x8xf32>
    %163 = vector.extract_strided_slice %124 {offsets = [0, 16], sizes = [16, 8], strides = [1, 1]} : vector<16x32xf32> to vector<16x8xf32>
    %cst_70 = arith.constant dense<0.000000e+00> : vector<8x16xf32>
    %164 = tpu.matmul %162, %163, %cst_70 {dimension_numbers = #tpu.dot_dimension_numbers<[1], [1], [0], [0], [0, 0, 1, 0], [], []>} : vector<8x8xf32>, vector<16x8xf32>, vector<8x16xf32> -> vector<8x16xf32>
    %165 = arith.addf %164, %9 : vector<8x16xf32>
    %cst_71 = arith.constant dense<0xFF800000> : vector<8xf32>
    %166 = vector.multi_reduction <maximumf>, %165, %cst_71 [1] : vector<8x16xf32> to vector<8xf32>
    %167 = vector.shape_cast %166 : vector<8xf32> to vector<8x1xf32>
    %168 = vector.broadcast %167 : vector<8x1xf32> to vector<8x16xf32>
    %169 = arith.subf %165, %168 : vector<8x16xf32>
    %170 = math.exp %169 : vector<8x16xf32>
    %cst_72 = arith.constant dense<0.000000e+00> : vector<8xf32>
    %171 = vector.multi_reduction <add>, %170, %cst_72 [1] : vector<8x16xf32> to vector<8xf32>
    %172 = vector.shape_cast %171 : vector<8xf32> to vector<8x1xf32>
    %173 = tpu.reciprocal %172 {approx = true} : vector<8x1xf32> -> vector<8x1xf32>
    %174 = vector.broadcast %173 : vector<8x1xf32> to vector<8x16xf32>
    %175 = arith.mulf %170, %174 : vector<8x16xf32>
    %176 = vector.extract_strided_slice %125 {offsets = [0, 16], sizes = [16, 8], strides = [1, 1]} : vector<16x32xf32> to vector<16x8xf32>
    %cst_73 = arith.constant dense<0.000000e+00> : vector<8x8xf32>
    %177 = tpu.matmul %175, %176, %cst_73 {dimension_numbers = #tpu.dot_dimension_numbers<[1], [0], [0], [1], [0, 0, 1, 1], [], []>} : vector<8x16xf32>, vector<16x8xf32>, vector<8x8xf32> -> vector<8x8xf32>
    %178 = vector.extract_strided_slice %120 {offsets = [0, 24], sizes = [8, 8], strides = [1, 1]} : vector<8x32xf32> to vector<8x8xf32>
    %179 = vector.extract_strided_slice %124 {offsets = [0, 24], sizes = [16, 8], strides = [1, 1]} : vector<16x32xf32> to vector<16x8xf32>
    %cst_74 = arith.constant dense<0.000000e+00> : vector<8x16xf32>
    %180 = tpu.matmul %178, %179, %cst_74 {dimension_numbers = #tpu.dot_dimension_numbers<[1], [1], [0], [0], [0, 0, 1, 0], [], []>} : vector<8x8xf32>, vector<16x8xf32>, vector<8x16xf32> -> vector<8x16xf32>
    %181 = arith.addf %180, %9 : vector<8x16xf32>
    %cst_75 = arith.constant dense<0xFF800000> : vector<8xf32>
    %182 = vector.multi_reduction <maximumf>, %181, %cst_75 [1] : vector<8x16xf32> to vector<8xf32>
    %183 = vector.shape_cast %182 : vector<8xf32> to vector<8x1xf32>
    %184 = vector.broadcast %183 : vector<8x1xf32> to vector<8x16xf32>
    %185 = arith.subf %181, %184 : vector<8x16xf32>
    %186 = math.exp %185 : vector<8x16xf32>
    %cst_76 = arith.constant dense<0.000000e+00> : vector<8xf32>
    %187 = vector.multi_reduction <add>, %186, %cst_76 [1] : vector<8x16xf32> to vector<8xf32>
    %188 = vector.shape_cast %187 : vector<8xf32> to vector<8x1xf32>
    %189 = tpu.reciprocal %188 {approx = true} : vector<8x1xf32> -> vector<8x1xf32>
    %190 = vector.broadcast %189 : vector<8x1xf32> to vector<8x16xf32>
    %191 = arith.mulf %186, %190 : vector<8x16xf32>
    %192 = vector.extract_strided_slice %125 {offsets = [0, 24], sizes = [16, 8], strides = [1, 1]} : vector<16x32xf32> to vector<16x8xf32>
    %cst_77 = arith.constant dense<0.000000e+00> : vector<8x8xf32>
    %193 = tpu.matmul %191, %192, %cst_77 {dimension_numbers = #tpu.dot_dimension_numbers<[1], [0], [0], [1], [0, 0, 1, 1], [], []>} : vector<8x16xf32>, vector<16x8xf32>, vector<8x8xf32> -> vector<8x8xf32>
    %194 = tpu.concatenate %145, %161, %177, %193 in 1 : vector<8x8xf32>, vector<8x8xf32>, vector<8x8xf32>, vector<8x8xf32> -> vector<8x32xf32>
    %195 = arith.truncf %194 : vector<8x32xf32> to vector<8x32xbf16>
    %cst_78 = arith.constant dense<0.000000e+00> : vector<8x32xf32>
    %196 = tpu.matmul %195, %127, %cst_78 {dimension_numbers = #tpu.dot_dimension_numbers<[1], [0], [0], [1], [0, 0, 1, 1], [], []>} : vector<8x32xbf16>, vector<32x32xbf16>, vector<8x32xf32> -> vector<8x32xf32>
    %197 = vector.broadcast %129 : vector<1x32xf32> to vector<8x32xf32>
    %198 = arith.addf %196, %197 : vector<8x32xf32>
    %c0_79 = arith.constant 0 : index
    %c0_80 = arith.constant 0 : index
    %c0_81 = arith.constant 0 : index
    %199 = vector.load %arg15[%c0_79, %c0_80, %c0_81] : memref<1x1x32xf32, #tpu.memory_space<vmem>>, vector<1x1x32xf32>
    %200 = vector.shape_cast %199 : vector<1x1x32xf32> to vector<1x32xf32>
    %c0_82 = arith.constant 0 : index
    %c0_83 = arith.constant 0 : index
    %c0_84 = arith.constant 0 : index
    %201 = vector.load %arg16[%c0_82, %c0_83, %c0_84] : memref<1x1x32xf32, #tpu.memory_space<vmem>>, vector<1x1x32xf32>
    %202 = vector.shape_cast %201 : vector<1x1x32xf32> to vector<1x32xf32>
    %203 = arith.addf %198, %116 : vector<8x32xf32>
    %cst_85 = arith.constant dense<0.000000e+00> : vector<8xf32>
    %204 = vector.multi_reduction <add>, %203, %cst_85 [1] : vector<8x32xf32> to vector<8xf32>
    %205 = vector.shape_cast %204 : vector<8xf32> to vector<8x1xf32>
    %cst_86 = arith.constant 3.200000e+01 : f32
    %206 = vector.broadcast %cst_86 : f32 to vector<8x1xf32>
    %207 = arith.divf %205, %206 : vector<8x1xf32>
    %208 = vector.broadcast %207 : vector<8x1xf32> to vector<8x32xf32>
    %209 = arith.subf %203, %208 : vector<8x32xf32>
    %210 = arith.mulf %209, %209 : vector<8x32xf32>
    %cst_87 = arith.constant dense<0.000000e+00> : vector<8xf32>
    %211 = vector.multi_reduction <add>, %210, %cst_87 [1] : vector<8x32xf32> to vector<8xf32>
    %212 = vector.shape_cast %211 : vector<8xf32> to vector<8x1xf32>
    %cst_88 = arith.constant 3.200000e+01 : f32
    %213 = vector.broadcast %cst_88 : f32 to vector<8x1xf32>
    %214 = arith.divf %212, %213 : vector<8x1xf32>
    %215 = vector.broadcast %207 : vector<8x1xf32> to vector<8x32xf32>
    %216 = arith.subf %203, %215 : vector<8x32xf32>
    %cst_89 = arith.constant 9.99999974E-6 : f32
    %217 = vector.broadcast %cst_89 : f32 to vector<8x1xf32>
    %218 = arith.addf %214, %217 : vector<8x1xf32>
    %219 = math.rsqrt %218 : vector<8x1xf32>
    %220 = vector.broadcast %219 : vector<8x1xf32> to vector<8x32xf32>
    %221 = arith.mulf %216, %220 : vector<8x32xf32>
    %222 = vector.broadcast %200 : vector<1x32xf32> to vector<8x32xf32>
    %223 = arith.mulf %221, %222 : vector<8x32xf32>
    %224 = vector.broadcast %202 : vector<1x32xf32> to vector<8x32xf32>
    %225 = arith.addf %223, %224 : vector<8x32xf32>
    %226 = arith.truncf %225 : vector<8x32xf32> to vector<8x32xbf16>
    %c0_90 = arith.constant 0 : index
    %c0_91 = arith.constant 0 : index
    %c0_92 = arith.constant 0 : index
    %227 = vector.load %arg17[%c0_90, %c0_91, %c0_92] : memref<1x32x128xbf16, #tpu.memory_space<vmem>>, vector<1x32x128xbf16>
    %228 = vector.shape_cast %227 : vector<1x32x128xbf16> to vector<32x128xbf16>
    %cst_93 = arith.constant dense<0.000000e+00> : vector<8x128xf32>
    %229 = tpu.matmul %226, %228, %cst_93 {dimension_numbers = #tpu.dot_dimension_numbers<[1], [0], [0], [1], [0, 0, 1, 1], [], []>} : vector<8x32xbf16>, vector<32x128xbf16>, vector<8x128xf32> -> vector<8x128xf32>
    %c0_94 = arith.constant 0 : index
    %c0_95 = arith.constant 0 : index
    %c0_96 = arith.constant 0 : index
    %230 = vector.load %arg18[%c0_94, %c0_95, %c0_96] : memref<1x1x128xf32, #tpu.memory_space<vmem>>, vector<1x1x128xf32>
    %231 = vector.shape_cast %230 : vector<1x1x128xf32> to vector<1x128xf32>
    %232 = vector.broadcast %231 : vector<1x128xf32> to vector<8x128xf32>
    %233 = arith.addf %229, %232 : vector<8x128xf32>
    %cst_97 = arith.constant 0.000000e+00 : f32
    %234 = vector.broadcast %cst_97 : f32 to vector<8x128xf32>
    %235 = arith.maximumf %233, %234 : vector<8x128xf32>
    %236 = arith.truncf %235 : vector<8x128xf32> to vector<8x128xbf16>
    %c0_98 = arith.constant 0 : index
    %c0_99 = arith.constant 0 : index
    %c0_100 = arith.constant 0 : index
    %237 = vector.load %arg19[%c0_98, %c0_99, %c0_100] : memref<1x128x32xbf16, #tpu.memory_space<vmem>>, vector<1x128x32xbf16>
    %238 = vector.shape_cast %237 : vector<1x128x32xbf16> to vector<128x32xbf16>
    %cst_101 = arith.constant dense<0.000000e+00> : vector<8x32xf32>
    %239 = tpu.matmul %236, %238, %cst_101 {dimension_numbers = #tpu.dot_dimension_numbers<[1], [0], [0], [1], [0, 0, 1, 1], [], []>} : vector<8x128xbf16>, vector<128x32xbf16>, vector<8x32xf32> -> vector<8x32xf32>
    %c0_102 = arith.constant 0 : index
    %c0_103 = arith.constant 0 : index
    %c0_104 = arith.constant 0 : index
    %240 = vector.load %arg20[%c0_102, %c0_103, %c0_104] : memref<1x1x32xf32, #tpu.memory_space<vmem>>, vector<1x1x32xf32>
    %241 = vector.shape_cast %240 : vector<1x1x32xf32> to vector<1x32xf32>
    %242 = vector.broadcast %241 : vector<1x32xf32> to vector<8x32xf32>
    %243 = arith.addf %239, %242 : vector<8x32xf32>
    %c0_105 = arith.constant 0 : index
    %c0_106 = arith.constant 0 : index
    %c0_107 = arith.constant 0 : index
    %244 = vector.load %arg21[%c0_105, %c0_106, %c0_107] : memref<1x1x32xf32, #tpu.memory_space<vmem>>, vector<1x1x32xf32>
    %245 = vector.shape_cast %244 : vector<1x1x32xf32> to vector<1x32xf32>
    %c0_108 = arith.constant 0 : index
    %c0_109 = arith.constant 0 : index
    %c0_110 = arith.constant 0 : index
    %246 = vector.load %arg22[%c0_108, %c0_109, %c0_110] : memref<1x1x32xf32, #tpu.memory_space<vmem>>, vector<1x1x32xf32>
    %247 = vector.shape_cast %246 : vector<1x1x32xf32> to vector<1x32xf32>
    %248 = arith.addf %243, %225 : vector<8x32xf32>
    %cst_111 = arith.constant dense<0.000000e+00> : vector<8xf32>
    %249 = vector.multi_reduction <add>, %248, %cst_111 [1] : vector<8x32xf32> to vector<8xf32>
    %250 = vector.shape_cast %249 : vector<8xf32> to vector<8x1xf32>
    %cst_112 = arith.constant 3.200000e+01 : f32
    %251 = vector.broadcast %cst_112 : f32 to vector<8x1xf32>
    %252 = arith.divf %250, %251 : vector<8x1xf32>
    %253 = vector.broadcast %252 : vector<8x1xf32> to vector<8x32xf32>
    %254 = arith.subf %248, %253 : vector<8x32xf32>
    %255 = arith.mulf %254, %254 : vector<8x32xf32>
    %cst_113 = arith.constant dense<0.000000e+00> : vector<8xf32>
    %256 = vector.multi_reduction <add>, %255, %cst_113 [1] : vector<8x32xf32> to vector<8xf32>
    %257 = vector.shape_cast %256 : vector<8xf32> to vector<8x1xf32>
    %cst_114 = arith.constant 3.200000e+01 : f32
    %258 = vector.broadcast %cst_114 : f32 to vector<8x1xf32>
    %259 = arith.divf %257, %258 : vector<8x1xf32>
    %260 = vector.broadcast %252 : vector<8x1xf32> to vector<8x32xf32>
    %261 = arith.subf %248, %260 : vector<8x32xf32>
    %cst_115 = arith.constant 9.99999974E-6 : f32
    %262 = vector.broadcast %cst_115 : f32 to vector<8x1xf32>
    %263 = arith.addf %259, %262 : vector<8x1xf32>
    %264 = math.rsqrt %263 : vector<8x1xf32>
    %265 = vector.broadcast %264 : vector<8x1xf32> to vector<8x32xf32>
    %266 = arith.mulf %261, %265 : vector<8x32xf32>
    %267 = vector.broadcast %245 : vector<1x32xf32> to vector<8x32xf32>
    %268 = arith.mulf %266, %267 : vector<8x32xf32>
    %269 = vector.broadcast %247 : vector<1x32xf32> to vector<8x32xf32>
    %270 = arith.addf %268, %269 : vector<8x32xf32>
    %c0_116 = arith.constant 0 : index
    %c0_117 = arith.constant 0 : index
    %271 = vector.load %arg26[%c0_116, %c0_117] : memref<8x32xf32, #tpu.memory_space<vmem>>, vector<8x32xf32>
    tpu.vector_store %arg26[%c0_116, %c0_117], %270 {strides = array<i32>} : memref<8x32xf32, #tpu.memory_space<vmem>>, vector<8x32xf32>,
    %c1_i32 = arith.constant 1 : i32
    %272 = arith.cmpi eq, %arg1, %c1_i32 : i32
    %273 = arith.extui %272 : i1 to i32
    %c0_i32_118 = arith.constant 0 : i32
    %274 = arith.cmpi ne, %273, %c0_i32_118 : i32
    scf.if %274 {
      %275 = arith.truncf %270 : vector<8x32xf32> to vector<8x32xbf16>
      %c0_119 = arith.constant 0 : index
      %c0_120 = arith.constant 0 : index
      %276 = vector.load %arg23[%c0_119, %c0_120] : memref<32x128xbf16, #tpu.memory_space<vmem>>, vector<32x128xbf16>
      %cst_121 = arith.constant dense<0.000000e+00> : vector<8x128xf32>
      %277 = tpu.matmul %275, %276, %cst_121 {dimension_numbers = #tpu.dot_dimension_numbers<[1], [0], [0], [1], [0, 0, 1, 1], [], []>} : vector<8x32xbf16>, vector<32x128xbf16>, vector<8x128xf32> -> vector<8x128xf32>
      %c0_122 = arith.constant 0 : index
      %c0_123 = arith.constant 0 : index
      %278 = vector.load %arg24[%c0_122, %c0_123] : memref<1x128xf32, #tpu.memory_space<vmem>>, vector<1x128xf32>
      %279 = vector.broadcast %278 : vector<1x128xf32> to vector<8x128xf32>
      %280 = arith.addf %277, %279 : vector<8x128xf32>
      %c0_124 = arith.constant 0 : index
      %c0_125 = arith.constant 0 : index
      %c0_126 = arith.constant 0 : index
      %281 = vector.load %arg25[%c0_124, %c0_125, %c0_126] : memref<1x8x128xf32, #tpu.memory_space<vmem>>, vector<1x8x128xf32>
      %282 = vector.shape_cast %281 : vector<1x8x128xf32> to vector<8x128xf32>
      %283 = vector.shape_cast %280 : vector<8x128xf32> to vector<1x8x128xf32>
      tpu.vector_store %arg25[%c0_124, %c0_125, %c0_126], %283 {strides = array<i32>} : memref<1x8x128xf32, #tpu.memory_space<vmem>>, vector<1x8x128xf32>,
    } else {
    }
    return
  }
  func.func @transform_0(%arg0: i32, %arg1: i32) -> (i32, i32, i32) {
    %c0_i32 = arith.constant 0 : i32
    %c0_i32_0 = arith.constant 0 : i32
    %c0_i32_1 = arith.constant 0 : i32
    return %arg0, %c0_i32, %c0_i32_0 : i32, i32, i32
  }
  func.func @transform_1(%arg0: i32, %arg1: i32) -> (i32, i32, i32) {
    %c0_i32 = arith.constant 0 : i32
    %c0_i32_0 = arith.constant 0 : i32
    %c0_i32_1 = arith.constant 0 : i32
    return %arg0, %c0_i32, %c0_i32_0 : i32, i32, i32
  }
  func.func @transform_2(%arg0: i32, %arg1: i32) -> (i32, i32, i32) {
    %c0_i32 = arith.constant 0 : i32
    %c0_i32_0 = arith.constant 0 : i32
    %c0_i32_1 = arith.constant 0 : i32
    return %arg0, %c0_i32, %c0_i32_0 : i32, i32, i32
  }
  func.func @transform_3(%arg0: i32, %arg1: i32) -> (i32, i32, i32) {
    %c0_i32 = arith.constant 0 : i32
    %c0_i32_0 = arith.constant 0 : i32
    %c0_i32_1 = arith.constant 0 : i32
    return %arg0, %c0_i32, %c0_i32_0 : i32, i32, i32
  }
  func.func @transform_4(%arg0: i32, %arg1: i32) -> (i32, i32, i32) {
    %c0_i32 = arith.constant 0 : i32
    %c0_i32_0 = arith.constant 0 : i32
    %c0_i32_1 = arith.constant 0 : i32
    return %arg1, %c0_i32, %c0_i32_0 : i32, i32, i32
  }
  func.func @transform_5(%arg0: i32, %arg1: i32) -> (i32, i32, i32) {
    %c0_i32 = arith.constant 0 : i32
    %c0_i32_0 = arith.constant 0 : i32
    %c0_i32_1 = arith.constant 0 : i32
    return %arg1, %c0_i32, %c0_i32_0 : i32, i32, i32
  }
  func.func @transform_6(%arg0: i32, %arg1: i32) -> (i32, i32, i32) {
    %c0_i32 = arith.constant 0 : i32
    %c0_i32_0 = arith.constant 0 : i32
    %c0_i32_1 = arith.constant 0 : i32
    return %arg1, %c0_i32, %c0_i32_0 : i32, i32, i32
  }
  func.func @transform_7(%arg0: i32, %arg1: i32) -> (i32, i32, i32) {
    %c0_i32 = arith.constant 0 : i32
    %c0_i32_0 = arith.constant 0 : i32
    %c0_i32_1 = arith.constant 0 : i32
    return %arg1, %c0_i32, %c0_i32_0 : i32, i32, i32
  }
  func.func @transform_8(%arg0: i32, %arg1: i32) -> (i32, i32, i32) {
    %c0_i32 = arith.constant 0 : i32
    %c0_i32_0 = arith.constant 0 : i32
    %c0_i32_1 = arith.constant 0 : i32
    return %arg1, %c0_i32, %c0_i32_0 : i32, i32, i32
  }
  func.func @transform_9(%arg0: i32, %arg1: i32) -> (i32, i32, i32) {
    %c0_i32 = arith.constant 0 : i32
    %c0_i32_0 = arith.constant 0 : i32
    %c0_i32_1 = arith.constant 0 : i32
    return %arg1, %c0_i32, %c0_i32_0 : i32, i32, i32
  }
  func.func @transform_10(%arg0: i32, %arg1: i32) -> (i32, i32, i32) {
    %c0_i32 = arith.constant 0 : i32
    %c0_i32_0 = arith.constant 0 : i32
    %c0_i32_1 = arith.constant 0 : i32
    return %arg1, %c0_i32, %c0_i32_0 : i32, i32, i32
  }
  func.func @transform_11(%arg0: i32, %arg1: i32) -> (i32, i32, i32) {
    %c0_i32 = arith.constant 0 : i32
    %c0_i32_0 = arith.constant 0 : i32
    %c0_i32_1 = arith.constant 0 : i32
    return %arg1, %c0_i32, %c0_i32_0 : i32, i32, i32
  }
  func.func @transform_12(%arg0: i32, %arg1: i32) -> (i32, i32, i32) {
    %c0_i32 = arith.constant 0 : i32
    %c0_i32_0 = arith.constant 0 : i32
    %c0_i32_1 = arith.constant 0 : i32
    return %arg1, %c0_i32, %c0_i32_0 : i32, i32, i32
  }
  func.func @transform_13(%arg0: i32, %arg1: i32) -> (i32, i32, i32) {
    %c0_i32 = arith.constant 0 : i32
    %c0_i32_0 = arith.constant 0 : i32
    %c0_i32_1 = arith.constant 0 : i32
    return %arg1, %c0_i32, %c0_i32_0 : i32, i32, i32
  }
  func.func @transform_14(%arg0: i32, %arg1: i32) -> (i32, i32, i32) {
    %c0_i32 = arith.constant 0 : i32
    %c0_i32_0 = arith.constant 0 : i32
    %c0_i32_1 = arith.constant 0 : i32
    return %arg1, %c0_i32, %c0_i32_0 : i32, i32, i32
  }
  func.func @transform_15(%arg0: i32, %arg1: i32) -> (i32, i32, i32) {
    %c0_i32 = arith.constant 0 : i32
    %c0_i32_0 = arith.constant 0 : i32
    %c0_i32_1 = arith.constant 0 : i32
    return %arg1, %c0_i32, %c0_i32_0 : i32, i32, i32
  }
  func.func @transform_16(%arg0: i32, %arg1: i32) -> (i32, i32, i32) {
    %c0_i32 = arith.constant 0 : i32
    %c0_i32_0 = arith.constant 0 : i32
    %c0_i32_1 = arith.constant 0 : i32
    return %arg1, %c0_i32, %c0_i32_0 : i32, i32, i32
  }
  func.func @transform_17(%arg0: i32, %arg1: i32) -> (i32, i32, i32) {
    %c0_i32 = arith.constant 0 : i32
    %c0_i32_0 = arith.constant 0 : i32
    %c0_i32_1 = arith.constant 0 : i32
    return %arg1, %c0_i32, %c0_i32_0 : i32, i32, i32
  }
  func.func @transform_18(%arg0: i32, %arg1: i32) -> (i32, i32, i32) {
    %c0_i32 = arith.constant 0 : i32
    %c0_i32_0 = arith.constant 0 : i32
    %c0_i32_1 = arith.constant 0 : i32
    return %arg1, %c0_i32, %c0_i32_0 : i32, i32, i32
  }
  func.func @transform_19(%arg0: i32, %arg1: i32) -> (i32, i32, i32) {
    %c0_i32 = arith.constant 0 : i32
    %c0_i32_0 = arith.constant 0 : i32
    %c0_i32_1 = arith.constant 0 : i32
    return %arg1, %c0_i32, %c0_i32_0 : i32, i32, i32
  }
  func.func @transform_20(%arg0: i32, %arg1: i32) -> (i32, i32, i32) {
    %c0_i32 = arith.constant 0 : i32
    %c0_i32_0 = arith.constant 0 : i32
    %c0_i32_1 = arith.constant 0 : i32
    return %arg1, %c0_i32, %c0_i32_0 : i32, i32, i32
  }
  func.func @transform_21(%arg0: i32, %arg1: i32) -> (i32, i32) {
    %c0_i32 = arith.constant 0 : i32
    %c0_i32_0 = arith.constant 0 : i32
    %c0_i32_1 = arith.constant 0 : i32
    return %c0_i32, %c0_i32_0 : i32, i32
  }
  func.func @transform_22(%arg0: i32, %arg1: i32) -> (i32, i32) {
    %c0_i32 = arith.constant 0 : i32
    %c0_i32_0 = arith.constant 0 : i32
    %c0_i32_1 = arith.constant 0 : i32
    return %c0_i32, %c0_i32_0 : i32, i32
  }
  func.func @transform_23(%arg0: i32, %arg1: i32) -> (i32, i32, i32) {
    %c0_i32 = arith.constant 0 : i32
    %c0_i32_0 = arith.constant 0 : i32
    %c0_i32_1 = arith.constant 0 : i32
    return %arg0, %c0_i32, %c0_i32_0 : i32, i32, i32
  }
}

</mosaic_0001>

<bundles_post_ra>
// kernel: decoder_forward.1
= control target key start
LH: loop header
LB: loop body
LE: loop exit
PB: predicated region body
PF: predicated region fallthrough
CT: control target
= control target key end

     0   :  { %s3424_s0 = inlined_call_operand.vmem [shape: f32[2,8,32], index: 0, kind: input, shape index: {}]   ;;  %s3425_s1 = inlined_call_operand.vmem [shape: bf16[2,16,32], index: 1, kind: input, shape index: {}]   ;;  %s3426_s2 = inlined_call_operand.vmem [shape: f32[2,8,8], index: 2, kind: input, shape index: {}]   ;;  %s3427_s3 = inlined_call_operand.vmem [shape: f32[2,8,16], index: 3, kind: input, shape index: {}]   ;;  %s3428_s4 = inlined_call_operand.vmem [shape: bf16[2,32,96], index: 4, kind: input, shape index: {}]   ;;  %s3429_s5 = inlined_call_operand.vmem [shape: bf16[2,32,32], index: 5, kind: input, shape index: {}]   ;;  %s3430_s6 = inlined_call_operand.vmem [shape: f32[2,1,32], index: 6, kind: input, shape index: {}]   ;;  %s3431_s7 = inlined_call_operand.vmem [shape: f32[2,1,32], index: 7, kind: input, shape index: {}]   ;;  %s3432_s8 = inlined_call_operand.vmem [shape: f32[2,1,32], index: 8, kind: input, shape index: {}]   ;;  %s3433_s9 = inlined_call_operand.vmem [shape: bf16[2,32,32], index: 9, kind: input, shape index: {}]   ;;  %s3434_s10 = inlined_call_operand.vmem [shape: bf16[2,32,64], index: 10, kind: input, shape index: {}]   ;;  %s3435_s11 = inlined_call_operand.vmem [shape: bf16[2,32,32], index: 11, kind: input, shape index: {}]   ;;  %s3436_s12 = inlined_call_operand.vmem [shape: f32[2,1,32], index: 12, kind: input, shape index: {}]   ;;  %s3437_s13 = inlined_call_operand.vmem [shape: f32[2,1,32], index: 13, kind: input, shape index: {}]   ;;  %s3438_s14 = inlined_call_operand.vmem [shape: f32[2,1,32], index: 14, kind: input, shape index: {}]   ;;  %s3439_s15 = inlined_call_operand.vmem [shape: bf16[2,32,128], index: 15, kind: input, shape index: {}]   ;;  %s3440_s16 = inlined_call_operand.vmem [shape: f32[2,1,128], index: 16, kind: input, shape index: {}]   ;;  %s3441_s17 = inlined_call_operand.vmem [shape: bf16[2,128,32], index: 17, kind: input, shape index: {}]   ;;  %s3442_s18 = inlined_call_operand.vmem [shape: f32[2,1,32], index: 18, kind: input, shape index: {}]   ;;  %s3443_s19 = inlined_call_operand.vmem [shape: f32[2,1,32], index: 19, kind: input, shape index: {}]   ;;  %s3444_s20 = inlined_call_operand.vmem [shape: f32[2,1,32], index: 20, kind: input, shape index: {}]   ;;  %s3445_s21 = inlined_call_operand.vmem [shape: bf16[32,128], index: 21, kind: input, shape index: {}]   ;;  %s3446_s22 = inlined_call_operand.vmem [shape: f32[1,128], index: 22, kind: input, shape index: {}]   ;;  %s3447_s23 = inlined_call_operand.hbm [shape: f32[2,8,128], index: 23, kind: output, shape index: {}]  }
   0x1   :  { %3465 = sst [smem:[#allocation20_spill]] %s3424_s0 }
   0x2   :  { %3466 = sst [smem:[#allocation21_spill]] %s3425_s1 }
   0x3   :  { %3467 = sst [smem:[#allocation22_spill]] %s3426_s2 }
   0x4   :  { %3468 = sst [smem:[#allocation23_spill]] %s3427_s3 }
   0x5   :  { %3469 = sst [smem:[#allocation24_spill]] %s3428_s4 }
   0x6   :  { %3470 = sst [smem:[#allocation25_spill]] %s3429_s5 }
   0x7   :  { %3471 = sst [smem:[#allocation26_spill]] %s3430_s6 }
   0x8   :  { %3472 = sst [smem:[#allocation27_spill]] %s3431_s7 }
   0x9   :  { %3473 = sst [smem:[#allocation28_spill]] %s3433_s9 }
   0xa   :  { %3474 = sst [smem:[#allocation29_spill]] %s3434_s10 }
   0xb   :  { %3475 = sst [smem:[#allocation30_spill]] %s3435_s11 }
   0xc   :  { %3476 = sst [smem:[#allocation31_spill]] %s3436_s12 }
   0xd   :  { %3477 = sst [smem:[#allocation32_spill]] %s3437_s13 }
   0xe   :  { %3478 = sst [smem:[#allocation33_spill]] %s3438_s14 }
   0xf   :  { %3479 = sst [smem:[#allocation34_spill]] %s3439_s15 }
  0x10   :  { %3480 = sst [smem:[#allocation35_spill]] %s3440_s16 }
  0x11   :  { %3481 = sst [smem:[#allocation36_spill]] %s3441_s17 }
  0x12   :  { %3482 = sst [smem:[#allocation37_spill]] %s3442_s18 }
  0x13   :  { %3483 = sst [smem:[#allocation38_spill]] %s3443_s19 }
  0x14   :  { %3484 = sst [smem:[#allocation39_spill]] %s3444_s20 }
  0x15   :  { %3485 = sst [smem:[#allocation40_spill]] %s3445_s21 }
  0x16   :  { %3486 = sst [smem:[#allocation41_spill]] %s3446_s22 }
  0x17   :  { %3487 = sst [smem:[#allocation42_spill]] %s3447_s23 }
  0x18   :  { %28 = vsyncpa [#allocation4], 0 }
  0x19   :  { %30 = vsyncpa [#allocation4 + $0x1], 0  ;;  %s2963_s4 = smov 0   ;;  %s2965_s30 = smov 0  }
  0x1a   :  { %s2967_s24 = smov 0   ;;  %s2969_s25 = smov 0  }
  0x1b   :  { %s2971_s5 = smov 0   ;;  %s2973_s1 = smov 0  }
  0x1c   :  { %s2975_s26 = smov 0   ;;  %s2977_s2 = smov 0  }
  0x1d LB: > { %3488 = sst [smem:[#allocation6_spill]] %s2798_s4  ;;  %s2386_s6 = sadd.s32 4294967295, %s2826_s2   ;;  %s2826_s2 = sphi %s2977_s2, %s36_s2   ;;  %s2822_s26 = sphi %s2975_s26, %s3564_s26   ;;  %s2818_s1 = sphi %s2973_s1, %s3563_s1   ;;  %s2814_s5 = sphi %s2971_s5, %s3562_s5   ;;  %s2810_s25 = sphi %s2969_s25, %s3561_s25   ;;  %s2806_s24 = sphi %s2967_s24, %s3560_s24   ;;  %s2802_s30 = sphi %s2965_s30, %s3559_s30   ;;  %s2798_s4 = sphi %s2963_s4, %s3558_s4  }
  0x1e   : > { %3489 = sst [smem:[#allocation7_spill]] %s2802_s30  ;;  %s2387_s27 = sadd.s32 4294967294, %s2826_s2  }
  0x1f   : > { %3490 = sst [smem:[#allocation8_spill]] %s2806_s24  ;;  %s45_s7 = sadd.s32 1, %s2818_s1 }
  0x20   : > { %3491 = sst [smem:[#allocation9_spill]] %s2810_s25  ;;  %p46_p0 = scmp.ge.s32.totalorder %s45_s7, 2 }
  0x21   : > { %3492 = sst [smem:[#allocation10_spill]] %s2814_s5  ;;  %s48_s28 = sadd.s32 1, %s2822_s26 }
  0x22   : > { %3493 = sst [smem:[#allocation11_spill]] %s2818_s1  ;;  %p653_p1 = scmp.ne.s32.totalorder %s2806_s24, %s2802_s30 }
  0x23   : > { %3494 = sst [smem:[#allocation12_spill]] %s2822_s26  ;;  %p654_p2 = scmp.eq.s32.totalorder %s2386_s6, 3 }
  0x24   : > { %3495 = sst [smem:[#allocation13_spill]] %s2826_s2  ;;  %s3566_s7 = smov (%p46_p0, %s45_s7), 0 }
  0x25   : > { %3496 = sst [smem:[#allocation14_spill]] %s3566_s7  ;;  %s3568_s28 = smov (!%p46_p0, %s48_s28), %s2822_s26 }
  0x26   : > { %p3012_p3 = por %p654_p2, %p653_p1  ;;  %p659_p4 = scmp.ne.s32.totalorder %s2802_s30, %s2798_s4 }
  0x27   : > { %p50_p5 = scmp.ge.s32.totalorder %s3568_s28, 2  ;;  %p660_p6 = scmp.eq.s32.totalorder %s2387_s27, 3 }
  0x28   : > { %s3497_s29 = scalar_select %p3012_p3, 1, 0 }
  0x29   : > { %p2390_p7 = scmp.ge.s32.totalorder %s2826_s2, 1  ;;  %p829_p8 = scmp.lt.s32.totalorder %s2826_s2, 5 }
  0x2a   : > { %3498 = sst [smem:[#allocation15_spill]] %s3497_s29  ;;  %s3570_s28 = smov (%p50_p5, %s3568_s28), 0 }
  0x2b   : > { %3499 = sst [smem:[#allocation16_spill]] %s3570_s28  ;;  %p3022_p9 = por %p660_p6, %p659_p4 }
  0x2c   : > { %p830_p10 = pnand %p2390_p7, %p829_p8  ;;  %s640_s0 = ssub.s32 %s2822_s26, %s3570_s28 }
  0x2d   : > { %s3500_s3 = scalar_select %p3022_p9, 1, 0 }
  0x2e   : > { %s643_s6 = sadd.s32 1, %s2806_s24  ;;  %p641_p11 = scmp.eq.s32.totalorder %s640_s0, 0 }
  0x2f   : > { %3501 = sst [smem:[#allocation17_spill]] %s3500_s3  ;;  %833 = sbr.rel (%p830_p10) target bundleno = 4178 (0x1052), region = 112 }
  0x30   : > { %s3030_s7 = scalar_select %p641_p11, %s2806_s24, %s643_s6  }
  0x32   : > { %3502 = sst [smem:[#allocation18_spill]] %s3030_s7 }
  0x34   : > { %s3453_s27 = sand.u32 1, %s2802_s30   ;;  %p970_p12 = scmp.lt.s32.totalorder %s2814_s5, 1 }
  0x35   : > { %s3036_s1 = sshll.u32 %s3453_s27, 3  ;;  %p987_p13 = scmp.lt.s32.totalorder %s2810_s25, 1 }
  0x36   : > { %s971_s3 = scalar_select %p970_p12, %s2814_s5, 1 }
  0x37   : > { %s3041_s4 = scalar_select %p987_p13, %s2810_s25, 1 }
  0x38   : > { %s3043_s0 = sshll.u32 %s971_s3, 3  ;;  %s3503_s26 = sld [smem:[#allocation20_spill]] }
  0x39   : > { %s2545_s28 = sshll.u32 %s3041_s4, 4  ;;  %s3508_s24 = sld [smem:[#allocation24_spill]] }
  0x3a   : > { %s3509_s29 = sld [smem:[#allocation25_spill]]  ;;  %s969_s30 = scalar_lea.vmem [#allocation3], %s3036_s1 }
  0x3b   : > { %s3511_s9 = sld [smem:[#allocation28_spill]] }
  0x3c   : > { %s3512_s10 = sld [smem:[#allocation29_spill]] }
  0x3d   : > { %s3513_s11 = sld [smem:[#allocation30_spill]] }
  0x3e   : > { %s973_s27 = scalar_lea.vmem %s3503_s26, %s3043_s0  ;;  %s3518_s15 = sld [smem:[#allocation34_spill]] }
  0x3f   : > { %s991_s2 = scalar_lea.vmem %s3508_s24, %s2545_s28  ;;  %s3520_s22 = sld [smem:[#allocation37_spill]] }
  0x40   : > { %s3072_s5 = scalar_lea.vmem %s3509_s29, %s2545_s28  ;;  %s3521_s19 = sld [smem:[#allocation36_spill]] }
  0x41   : > { %s3085_s16 = scalar_lea.vmem %s3511_s9, %s2545_s28  ;;  %s3522_s26 = sld [smem:[#allocation38_spill]] }
  0x42   : > { %s3090_s7 = scalar_lea.vmem %s3512_s10, %s2545_s28  ;;  %s3519_s10 = sld [smem:[#allocation35_spill]] }
  0x43   : > { %s3095_s21 = scalar_lea.vmem %s3513_s11, %s2545_s28 }
  0x44   : > { %3514 = sst [smem:[#allocation19_spill]] %s3095_s21  ;;  %s3112_s9 = scalar_lea.vmem %s3518_s15, %s2545_s28 }
  0x45   : > { %s2551_s21 = sshll.u32 %s3041_s4, 6  ;;  %s1045_s12 = scalar_lea.vmem %s3520_s22, %s3041_s4 }
  0x46   : > { %s3126_s13 = scalar_lea.vmem %s3521_s19, %s2551_s21  ;;  %s3523_s15 = sld [smem:[#allocation39_spill]] }
  0x47   : > { %s1048_s18 = scalar_lea.vmem %s3522_s26, %s3041_s4 }
  0x48   : > { %s1037_s11 = scalar_lea.vmem %s3519_s10, %s3041_s4  ;;  %s3524_s10 = sld [smem:[#allocation9_spill]] }
  0x4c   : > { %s1051_s14 = scalar_lea.vmem %s3523_s15, %s3041_s4 }
  0x4e   : > { %p2411_p0 = scmp.ne.s32.totalorder %s3524_s10, 0 }
  0x50   : > { %1056 = sbr.rel (%p2411_p0) target bundleno = 87 (0x57), region = 116 }
  0x55   : > { %v1057_v0 = vld [vmem:[%s973_s27] sm:$0xff]  ;;  %vm1058_vm0 = vcmask 261120  }
  0x56   : > { %1059 = vst.msk [vmem:[#allocation2] sm:$0xff] %vm1058_vm0, %v1057_v0 }
  0x57 PF: > { %v2554_v1 = vld [vmem:[%s991_s2 + $0x8] sm:$0xff]  ;;  %v2553_v2 = vld [vmem:[%s991_s2] sm:$0xff]  ;;  %vm1082_vm1 = vcmask 261120   ;;  %s2828_s15 = smov 88   ;;  %s2829_s27 = smov 96   ;;  %vm1107_vm2 = vcmask 64512  }
  0x58   : > { %1092 = vmatpush.bf16.msra.mxu0 %v2554_v1  ;;  %s2830_s26 = smov 120   ;;  %s3525_s22 = sld [smem:[#allocation22_spill]]  ;;  %vm1377_vm3 = vcmask 130048   ;;  %vm1379_vm4 = vcmask 195584  }
  0x59   : > { %s2831_s29 = smov 56   ;;  %s2832_s3 = smov 72  }
  0x5a   : > { %s2833_s25 = smov 104   ;;  %s2834_s17 = smov 64  }
  0x5b   : > { %s2835_s23 = smov 80   ;;  %s2836_s20 = smov 112  }
  0x5c   : > { %1093 = vmatpush.bf16.msra.mxu0 %v2553_v2  ;;  %s2837_s6 = smov 48   ;;  %s2838_s28 = smov 40  }
  0x5d   : > { %v3138_v3 = vld [vmem:[#allocation2] sm:$0xff]  ;;  %s2839_s24 = smov 8   ;;  %s2840_s10 = smov 24  }
  0x5e   : > { %v1065_v4 = vpack.c.bf16 %v3138_v3, %v3138_v3  ;;  %s3526_s19 = scalar_lea.vmem %s3525_s22, %s3043_s0  ;;  %s2841_s2 = smov 16  }
  0x5f   : > { %v3159_v8 = vld [vmem:[%s3526_s19] sm:$0xff]  ;;  %s3527_s22 = sld [smem:[#allocation26_spill]] }
  0x60   : > { %2420 = vmatmul.msk.bf16.vlgmr.msra.gmra.mxu0 %vm1082_vm1, %v1065_v4  ;;  %v2556_v4 = vld [vmem:[%s3072_s5 + $0x8] sm:$0xff] }
  0x61   : > { %1406 = vmatpush.bf16.msrb.mxu0 %v2556_v4 }
  0x65   : > { %s3528_s19 = scalar_lea.vmem %s3527_s22, %s3041_s4 }
  0xdd   : > { %v3143_v5 = vpop.f32.mrf.mxu0 }
  0xde   : > { %1171 = vrot.lane.b32.xlu2 %v3143_v5, %s2828_s15  ;;  %1105 = vrot.lane.b32.xlu0 %v3143_v5, %s2829_s27 }
  0xe5   : > { %v1097_v6 = vpop.f32.mrf.mxu0 }
  0xe6   : > { %1169 = vrot.lane.b32.xlu2 %v3143_v5, %s2830_s26 }
 0x138   : > { %v1172_v19 = vpop.permute.xlu2 %1171 }
 0x140   : > { %v1170_v23 = vpop.permute.xlu2 %1169 }
 0x150   : > { %v1106_v7 = vpop.permute.xlu0 %1105 }
 0x151   : > { %2421 = vmatpush.xpose.msk.msra.mxu1 %vm1107_vm2, %v1106_v7 }
 0x154   : > { %2422 = vmatmul.msk.f32.vlgmr.msra.gmra.mxu1 %vm1107_vm2, %v3143_v5 }
 0x1d1   : > { %v1129_v9 = vpop.f32.mrf.mxu1 }
 0x1d2   : > { %v1130_v10 = vadd.f32 %v1129_v9, %v3159_v8 }
 0x1d4   : > { %v1132_v11 = vsel %vm1107_vm2, %v1130_v10, -inf }
 0x1d5   : > { %1133 = vmax.xlane.f32.xlu0 %v1132_v11 }
 0x1e9   : > { %1208 = vrot.lane.b32.xlu0 %v3143_v5, %s2831_s29  ;;  %s3533_s29 = scalar_lea.vmem %s3432_s8, %s3041_s4 }
 0x1f1   : > { %1301 = vrot.lane.b32.xlu0 %v3143_v5, %s2832_s3 }
 0x1f9   : > { %1299 = vrot.lane.b32.xlu0 %v3143_v5, %s2833_s25 }
 0x248   : > { %v1134_v12 = vpop.xlane.xlu0 %1133 }
 0x249   : > { %v1135_v13 = vsub.f32 %v1130_v10, %v1134_v12 }
 0x24b   : > { %v1136_v14 = vmul.f32 1.442695, %v1135_v13  ;;  %v2681_v13 = vld [vmem:[%s3528_s19] ss:$0 sm:$0xff] }
 0x24d   : > { %2691 = vpow2.f32 %v1136_v14 }
 0x253   : > { %v2692_v15 = vpop.eup %2691 }
 0x254   : > { %v1138_v16 = vsel %vm1107_vm2, %v2692_v15, 0.0 }
 0x255   : > { %1139 = vadd.xlane.f32.xlu1 %v1138_v16 }
 0x25b   : > { %v1209_v20 = vpop.permute.xlu0 %1208 }
 0x263   : > { %v1302_v24 = vpop.permute.xlu0 %1301 }
 0x26b   : > { %v1300_v38 = vpop.permute.xlu0 %1299 }
 0x26e   : > { %1143 = vrot.lane.b32.xlu1 %v3143_v5, %s2834_s17 }
 0x2c8   : > { %v1140_v17 = vpop.xlane.xlu1 %1139 }
 0x2c9   : > { %2693 = vrcp.f32 %v1140_v17 }
 0x2cf   : > { %v2694_v18 = vpop.eup %2693 }
 0x2d0   : > { %v1142_v22 = vmul.f32 %v2694_v18, %v2692_v15 }
 0x2e0   : > { %v1144_v21 = vpop.permute.xlu1 %1143 }
 0x2e1   : > { %1164 = vmatpush.msra.mxu2 %v1144_v21  ;;  %v2559_v21 = vld [vmem:[%s3090_s7] sm:$0xff] }
 0x2e2   : > { %2423 = vmatmul.msk.f32.vlgmr.msra.gmra.mxu2 %vm1107_vm2, %v1142_v22 }
 0x2e3   : > { %2424 = vmatpush.xpose.msk.msrb.mxu2 %vm1107_vm2, %v1172_v19  ;;  %v2842_v19 = vmov 32.0  }
 0x2e7   : > { %1229 = vmatpush.msra.mxu2 %v1209_v20  ;;  %v2560_v20 = vld [vmem:[%s3090_s7 + $0x8] sm:$0xff] }
 0x2ea   : > { %2425 = vmatmul.msk.f32.vlgmr.msrb.gmra.mxu2 %vm1107_vm2, %v1170_v23 }
 0x2eb   : > { %2430 = vmatpush.xpose.msk.msrb.mxu2 %vm1107_vm2, %v1302_v24 }
 0x365   : > { %v3174_v25 = vpop.f32.mrf.mxu2 }
 0x36d   : > { %v1194_v26 = vpop.f32.mrf.mxu2 }
 0x36e   : > { %v1195_v27 = vadd.f32 %v1194_v26, %v3159_v8 }
 0x370   : > { %v1197_v28 = vsel %vm1107_vm2, %v1195_v27, -inf }
 0x371   : > { %1198 = vmax.xlane.f32.xlu2 %v1197_v28 }
 0x389   : > { %1236 = vrot.lane.b32.xlu2 %v3143_v5, %s2835_s23 }
 0x3e4   : > { %v1199_v29 = vpop.xlane.xlu2 %1198 }
 0x3e5   : > { %v1200_v30 = vsub.f32 %v1195_v27, %v1199_v29 }
 0x3e7   : > { %v1201_v31 = vmul.f32 1.442695, %v1200_v30 }
 0x3e9   : > { %2695 = vpow2.f32 %v1201_v31 }
 0x3ec   : > { %v1237_v32 = vpop.permute.xlu2 %1236 }
 0x3ed   : > { %2427 = vmatpush.xpose.msk.msrb.mxu1 %vm1107_vm2, %v1237_v32 }
 0x3ef   : > { %v2696_v33 = vpop.eup %2695 }
 0x3f0   : > { %v1203_v34 = vsel %vm1107_vm2, %v2696_v33, 0.0 }
 0x3f1   : > { %1204 = vadd.xlane.f32.xlu1 %v1203_v34  ;;  %v2557_v34 = vld [vmem:[%s3085_s16] sm:$0xff] }
 0x40a   : > { %1234 = vrot.lane.b32.xlu1 %v3143_v5, %s2836_s20 }
 0x464   : > { %v1205_v35 = vpop.xlane.xlu1 %1204 }
 0x465   : > { %2697 = vrcp.f32 %v1205_v35 }
 0x46b   : > { %v2698_v36 = vpop.eup %2697 }
 0x46c   : > { %v1207_v37 = vmul.f32 %v2698_v36, %v2696_v33  ;;  %v2558_v33 = vld [vmem:[%s3085_s16 + $0x8] sm:$0xff]  ;;  %s3541_s16 = sld [smem:[#allocation33_spill]] }
 0x46e   : > { %2426 = vmatmul.msk.f32.vlgmr.msra.gmra.mxu2 %vm1107_vm2, %v1207_v37 }
 0x46f   : > { %1516 = vmatpush.bf16.msra.mxu2 %v2560_v20 }
 0x472   : > { %s3542_s7 = scalar_lea.vmem %s3541_s16, %s3041_s4 }
 0x473   : > { %1517 = vmatpush.bf16.msra.mxu2 %v2559_v21 }
 0x476   : > { %2431 = vmatmul.msk.f32.vlgmr.msrb.gmra.mxu2 %vm1107_vm2, %v1300_v38 }
 0x47c   : > { %v1235_v39 = vpop.permute.xlu1 %1234 }
 0x47d   : > { %2428 = vmatmul.msk.f32.vlgmr.msrb.gmra.mxu1 %vm1107_vm2, %v1235_v39 }
 0x4f1   : > { %v1231_v40 = vpop.f32.mrf.mxu2 }
 0x4f9   : > { %v1324_v41 = vpop.f32.mrf.mxu2 }
 0x4fa   : > { %v1325_v42 = vadd.f32 %v1324_v41, %v3159_v8  ;;  %v1259_v43 = vpop.f32.mrf.mxu1 }
 0x4fb   : > { %v1260_v44 = vadd.f32 %v1259_v43, %v3159_v8 }
 0x4fc   : > { %v1327_v45 = vsel %vm1107_vm2, %v1325_v42, -inf }
 0x4fd   : > { %1328 = vmax.xlane.f32.xlu0 %v1327_v45  ;;  %v1262_v46 = vsel %vm1107_vm2, %v1260_v44, -inf }
 0x4fe   : > { %1263 = vmax.xlane.f32.xlu2 %v1262_v46 }
 0x511   : > { %1273 = vrot.lane.b32.xlu0 %v3143_v5, %s2837_s6  ;;  %s3529_s6 = sld [smem:[#allocation21_spill]] }
 0x570   : > { %v1329_v47 = vpop.xlane.xlu0 %1328 }
 0x571   : > { %v1330_v48 = vsub.f32 %v1325_v42, %v1329_v47  ;;  %v1264_v49 = vpop.xlane.xlu2 %1263 }
 0x572   : > { %v1265_v50 = vsub.f32 %v1260_v44, %v1264_v49 }
 0x573   : > { %v1331_v51 = vmul.f32 1.442695, %v1330_v48  ;;  %v2683_v48 = vld [vmem:[%s3533_s29] ss:$0 sm:$0xff] }
 0x574   : > { %v1266_v52 = vmul.f32 1.442695, %v1265_v50 }
 0x575   : > { %2699 = vpow2.f32 %v1331_v51 }
 0x576   : > { %2701 = vpow2.f32 %v1266_v52 }
 0x57b   : > { %v2700_v53 = vpop.eup %2699 }
 0x57c   : > { %v2702_v54 = vpop.eup %2701  ;;  %v1333_v55 = vsel %vm1107_vm2, %v2700_v53, 0.0 }
 0x57d   : > { %1334 = vadd.xlane.f32.xlu2 %v1333_v55  ;;  %v1268_v56 = vsel %vm1107_vm2, %v2702_v54, 0.0 }
 0x57e   : > { %1269 = vadd.xlane.f32.xlu1 %v1268_v56 }
 0x583   : > { %v1274_v57 = vpop.permute.xlu0 %1273 }
 0x584   : > { %1294 = vmatpush.msra.mxu3 %v1274_v57 }
 0x595   : > { %1338 = vrot.lane.b32.xlu2 %v3143_v5, %s2838_s28  ;;  %v2555_v5 = vld [vmem:[%s3072_s5] sm:$0xff]  ;;  %s3530_s28 = scalar_lea.vmem %s3529_s6, %s3043_s0  ;;  %s3531_s5 = sld [smem:[#allocation27_spill]] }
 0x596   : > { %1407 = vmatpush.bf16.msrb.mxu0 %v2555_v5  ;;  %v2552_v23 = vld [vmem:[%s3530_s28] sm:$0xff]  ;;  %s3534_s6 = sld [smem:[#allocation23_spill]] }
 0x597   : > { %1365 = vrot.lane.b32.xlu1 %v1231_v40, %s2839_s24  ;;  %2463 = vmatmul.msk.bf16.vlgmr.msra.gmra.mxu2 %vm1082_vm1, %v2552_v23 }
 0x59a   : > { %1479 = vmatpush.bf16.msra.mxu0 %v2558_v33 }
 0x59b   : > { %s3532_s21 = scalar_lea.vmem %s3531_s5, %s3041_s4 }
 0x59c   : > { %v2682_v46 = vld [vmem:[%s3532_s21] ss:$0 sm:$0xff]  ;;  %s3535_s28 = scalar_lea.vmem %s3534_s6, %s3043_s0  ;;  %s3536_s0 = sld [smem:[#allocation19_spill]] }
 0x59e   : > { %1480 = vmatpush.bf16.msra.mxu0 %v2557_v34 }
 0x5f0   : > { %v1335_v58 = vpop.xlane.xlu2 %1334 }
 0x5f1   : > { %2703 = vrcp.f32 %v1335_v58  ;;  %v1270_v59 = vpop.xlane.xlu1 %1269 }
 0x5f2   : > { %2705 = vrcp.f32 %v1270_v59 }
 0x5f3   : > { %2707 = vrcp.f32 %v2842_v19 }
 0x5f7   : > { %v2704_v60 = vpop.eup %2703 }
 0x5f8   : > { %v2706_v61 = vpop.eup %2705  ;;  %v1337_v62 = vmul.f32 %v2704_v60, %v2700_v53  ;;  %v1339_v63 = vpop.permute.xlu2 %1338 }
 0x5f9   : > { %1359 = vmatpush.msra.mxu1 %v1339_v63  ;;  %v1272_v0 = vmul.f32 %v2706_v61, %v2702_v54  ;;  %v2708_v22 = vpop.eup %2707  ;;  %v1064_v63 = vld [vmem:[%s3535_s28] sm:$0xff] }
 0x5fa   : > { %2432 = vmatmul.msk.f32.vlgmr.msra.gmra.mxu1 %vm1107_vm2, %v1337_v62  ;;  %v1420_v24 = vmul.f32 32.0, %v2708_v22  ;;  %vm1424_vm5 = vweird.f32 %v2708_v22 }
 0x5fb   : > { %2429 = vmatmul.msk.f32.vlgmr.msra.gmra.mxu3 %vm1107_vm2, %v1272_v0 }
 0x609   : > { %v1366_v6 = vpop.permute.xlu1 %1365 }
 0x60a   : > { %v1376_v7 = vsel %vm1107_vm2, %v3174_v25, %v1366_v6 }
 0x61a   : > { %v3228_v35 = vpop.f32.mrf.mxu2 }
 0x622   : > { %v3233_v39 = vpop.f32.mrf.mxu2 }
 0x623   : > { %1602 = vrot.lane.b32.xlu1 %v3233_v39, %s2830_s26  ;;  %2464 = vmatpush.xpose.msk.msrb.mxu1 %vm1107_vm2, %v3233_v39  ;;  %v2661_v19 = vpack.i.bf16 %v3228_v35, %v3233_v39 }
 0x627   : > { %2465 = vmatpush.xpose.msk.msrb.mxu1 %vm1107_vm2, %v3228_v35 }
 0x62b   : > { %1600 = vrot.lane.b32.xlu1 %v3228_v35, %s2830_s26 }
 0x633   : > { %1674 = vrot.lane.b32.xlu1 %v3233_v39, %s2836_s20 }
 0x63b   : > { %1672 = vrot.lane.b32.xlu1 %v3228_v35, %s2836_s20 }
 0x677   : > { %v1361_v1 = vpop.f32.mrf.mxu1 }
 0x678   : > { %1373 = vrot.lane.b32.xlu2 %v1361_v1, %s2840_s10 }
 0x67e   : > { %v1296_v2 = vpop.f32.mrf.mxu3 }
 0x67f   : > { %1369 = vrot.lane.b32.xlu0 %v1296_v2, %s2841_s2 }
 0x695   : > { %v1603_v53 = vpop.permute.xlu1 %1602 }
 0x696   : > { %2468 = vmatpush.xpose.msk.msrb.mxu3 %vm1107_vm2, %v1603_v53 }
 0x69d   : > { %v1601_v55 = vpop.permute.xlu1 %1600 }
 0x69e   : > { %2469 = vmatpush.xpose.msk.msrb.mxu3 %vm1107_vm2, %v1601_v55 }
 0x6a5   : > { %v1675_v58 = vpop.permute.xlu1 %1674 }
 0x6a6   : > { %2472 = vmatpush.xpose.msk.msrb.mxu2 %vm1107_vm2, %v1675_v58 }
 0x6ad   : > { %v1673_v60 = vpop.permute.xlu1 %1672 }
 0x6ae   : > { %2473 = vmatpush.xpose.msk.msrb.mxu2 %vm1107_vm2, %v1673_v60 }
 0x6d2   : > { %v1374_v9 = vpop.permute.xlu2 %1373 }
 0x6f1   : > { %v1370_v8 = vpop.permute.xlu0 %1369 }
 0x6f2   : > { %v1378_v10 = vsel %vm1377_vm3, %v1376_v7, %v1370_v8 }
 0x6f3   : > { %v1380_v11 = vsel %vm1379_vm4, %v1378_v10, %v1374_v9 }
 0x6f4   : > { %v1381_v12 = vpack.c.bf16 %v1380_v11, %v1380_v11 }
 0x6f6   : > { %2441 = vmatmul.msk.bf16.vlgmr.msrb.gmra.mxu0 %vm1082_vm1, %v1381_v12 }
 0x773   : > { %v1409_v14 = vpop.f32.mrf.mxu0 }
 0x774   : > { %v1410_v15 = vadd.f32 %v2681_v13, %v1409_v14 }
 0x776   : > { %v1415_v16 = vadd.f32 %v1410_v15, %v3138_v3  ;;  %v1421_v3 = vsub.f32 1.0, %v1420_v24 }
 0x778   : > { %v1416_v17 = vsel %vm1082_vm1, %v1415_v16, 0.0  ;;  %v1422_v25 = vmul.f32 %v2708_v22, %v1421_v3 }
 0x779   : > { %1417 = vadd.xlane.f32.xlu0 %v1416_v17 }
 0x77a   : > { %v1423_v26 = vadd.f32 %v2708_v22, %v1422_v25 }
 0x77b   : > { %v1411_v18 = vpop.f32.mrf.mxu0 }
 0x77c   : > { %v3222_v27 = vsel %vm1424_vm5, %v2708_v22, %v1423_v26 }
 0x78d   : > { %1746 = vrot.lane.b32.xlu0 %v3233_v39, %s2833_s25 }
 0x7ec   : > { %v1418_v28 = vpop.xlane.xlu0 %1417 }
 0x7ed   : > { %v1426_v29 = vmul.f32 %v3222_v27, %v1418_v28 }
 0x7ef   : > { %v1427_v30 = vsub.f32 %v1415_v16, %v1426_v29 }
 0x7f1   : > { %v1428_v31 = vmul.f32 %v1427_v30, %v1427_v30 }
 0x7f3   : > { %v1429_v32 = vsel %vm1082_vm1, %v1428_v31, 0.0 }
 0x7f4   : > { %1430 = vadd.xlane.f32.xlu2 %v1429_v32 }
 0x7ff   : > { %v1747_v54 = vpop.permute.xlu0 %1746 }
 0x800   : > { %2476 = vmatpush.xpose.msk.msra.mxu3 %vm1107_vm2, %v1747_v54 }
 0x80c   : > { %1744 = vrot.lane.b32.xlu2 %v3228_v35, %s2833_s25 }
 0x867   : > { %v1431_v36 = vpop.xlane.xlu2 %1430 }
 0x868   : > { %v1432_v37 = vmul.f32 %v1431_v36, %v3222_v27 }
 0x86a   : > { %v1433_v38 = vadd.f32 1e-05, %v1432_v37 }
 0x86c   : > { %2709 = vrsqrt.f32 %v1433_v38  ;;  %vm1440_vm7 = vweird.f32 %v1433_v38 }
 0x86f   : > { %v1745_v56 = vpop.permute.xlu2 %1744 }
 0x870   : > { %2477 = vmatpush.xpose.msk.msra.mxu3 %vm1107_vm2, %v1745_v56 }
 0x872   : > { %v2710_v40 = vpop.eup %2709 }
 0x873   : > { %v1435_v41 = vmul.f32 %v2710_v40, %v1433_v38  ;;  %vm1441_vm6 = vweird.f32 %v2710_v40 }
 0x874   : > { %vm1442_vm8 = vmor %vm1440_vm7, %vm1441_vm6 }
 0x875   : > { %v1436_v42 = vmul.f32 %v2710_v40, %v1435_v41 }
 0x877   : > { %v1437_v43 = vmul.f32 0.5, %v1436_v42 }
 0x879   : > { %v1438_v44 = vsub.f32 1.5, %v1437_v43 }
 0x87b   : > { %v1439_v45 = vmul.f32 %v2710_v40, %v1438_v44 }
 0x87d   : > { %v1443_v47 = vsel %vm1442_vm8, %v2710_v40, %v1439_v45 }
 0x87e   : > { %v1444_v49 = vmul.f32 %v1443_v47, %v1427_v30 }
 0x880   : > { %v1448_v50 = vmul.f32 %v2682_v46, %v1444_v49 }
 0x882   : > { %v3257_v51 = vadd.f32 %v2683_v48, %v1448_v50 }
 0x884   : > { %v1453_v52 = vpack.c.bf16 %v3257_v51, %v3257_v51 }
 0x886   : > { %2450 = vmatmul.msk.bf16.vlgmr.msra.gmra.mxu0 %vm1082_vm1, %v1453_v52 }
 0x903   : > { %v1482_v57 = vpop.f32.mrf.mxu0 }
 0x904   : > { %1598 = vrot.lane.b32.xlu1 %v1482_v57, %s2830_s26  ;;  %2466 = vmatmul.msk.f32.vlgmr.msrb.gmra.mxu1 %vm1107_vm2, %v1482_v57 }
 0x90b   : > { %v1484_v59 = vpop.f32.mrf.mxu0 }
 0x90c   : > { %1670 = vrot.lane.b32.xlu1 %v1482_v57, %s2836_s20  ;;  %s3539_s20 = sld [smem:[#allocation32_spill]] }
 0x914   : > { %1742 = vrot.lane.b32.xlu1 %v1482_v57, %s2833_s25 }
 0x976   : > { %v1599_v61 = vpop.permute.xlu1 %1598 }
 0x977   : > { %2470 = vmatmul.msk.f32.vlgmr.msrb.gmra.mxu3 %vm1107_vm2, %v1599_v61 }
 0x97e   : > { %v1671_v62 = vpop.permute.xlu1 %1670 }
 0x97f   : > { %2474 = vmatmul.msk.f32.vlgmr.msrb.gmra.mxu2 %vm1107_vm2, %v1671_v62 }
 0x981   : > { %v1555_v0 = vpop.f32.mrf.mxu1 }
 0x982   : > { %v1556_v1 = vadd.f32 %v1555_v0, %v1064_v63  ;;  %v2562_v0 = vld [vmem:[%s3536_s0 + $0x8] sm:$0xff] }
 0x983   : > { %1854 = vmatpush.bf16.msra.mxu2 %v2562_v0 }
 0x984   : > { %v1558_v2 = vsel %vm1377_vm3, %v1556_v1, -inf }
 0x985   : > { %1559 = vmax.xlane.f32.xlu0 %v1558_v2 }
 0x986   : > { %v1743_v4 = vpop.permute.xlu1 %1742 }
 0x987   : > { %2478 = vmatmul.msk.f32.vlgmr.msra.gmra.mxu3 %vm1107_vm2, %v1743_v4 }
 0x9f8   : > { %v1560_v5 = vpop.xlane.xlu0 %1559 }
 0x9f9   : > { %v1561_v6 = vsub.f32 %v1556_v1, %v1560_v5  ;;  %v2561_v1 = vld [vmem:[%s3536_s0] sm:$0xff]  ;;  %s3547_s0 = sld [smem:[#allocation9_spill]] }
 0x9fa   : > { %v1627_v7 = vpop.f32.mrf.mxu3  ;;  %1855 = vmatpush.bf16.msra.mxu2 %v2561_v1 }
 0x9fb   : > { %v1562_v8 = vmul.f32 1.442695, %v1561_v6  ;;  %v1628_v9 = vadd.f32 %v1627_v7, %v1064_v63 }
 0x9fd   : > { %2711 = vpow2.f32 %v1562_v8  ;;  %v1630_v10 = vsel %vm1377_vm3, %v1628_v9, -inf }
 0x9fe   : > { %1631 = vmax.xlane.f32.xlu1 %v1630_v10 }
 0x9ff   : > { %p2530_p1 = scmp.ne.s32.totalorder %s3547_s0, 1 }
 0xa02   : > { %v1699_v11 = vpop.f32.mrf.mxu2 }
 0xa03   : > { %v2712_v12 = vpop.eup %2711  ;;  %v1700_v13 = vadd.f32 %v1699_v11, %v1064_v63 }
 0xa04   : > { %v1564_v14 = vsel %vm1377_vm3, %v2712_v12, 0.0 }
 0xa05   : > { %v1702_v15 = vsel %vm1377_vm3, %v1700_v13, -inf }
 0xa06   : > { %1703 = vmax.xlane.f32.xlu2 %v1702_v15  ;;  %1565 = vadd.xlane.f32.xlu1 %v1564_v14 }
 0xa0a   : > { %v1771_v16 = vpop.f32.mrf.mxu3 }
 0xa0b   : > { %v1772_v17 = vadd.f32 %v1771_v16, %v1064_v63 }
 0xa0d   : > { %v1774_v18 = vsel %vm1377_vm3, %v1772_v17, -inf }
 0xa0e   : > { %1775 = vmax.xlane.f32.xlu0 %v1774_v18 }
 0xa1e   : > { %2662 = vrot.lane.b32.xlu2 %v2661_v19, %s2829_s27 }
 0xa1f   : > { %2667 = vrot.lane.b32.xlu1 %v2661_v19, %s2828_s15 }
 0xa26   : > { %2677 = vrot.lane.b32.xlu2 %v2661_v19, %s2832_s3  ;;  %s3537_s3 = sld [smem:[#allocation31_spill]] }
 0xa2c   : > { %s3538_s25 = scalar_lea.vmem %s3537_s3, %s3041_s4  ;;  %s3548_s3 = sld [smem:[#allocation40_spill]] (!%p2530_p1) }
 0xa2d   : > { %v2684_v10 = vld [vmem:[%s3538_s25] ss:$0 sm:$0xff] }
 0xa71   : > { %v1632_v20 = vpop.xlane.xlu1 %1631 }
 0xa72   : > { %v1633_v21 = vsub.f32 %v1628_v9, %v1632_v20 }
 0xa74   : > { %v1634_v22 = vmul.f32 1.442695, %v1633_v21  ;;  %v2564_v21 = vld [vmem:[%s3112_s9 + $0x8] sm:$0xff] }
 0xa76   : > { %2713 = vpow2.f32 %v1634_v22  ;;  %v2563_v22 = vld [vmem:[%s3112_s9] sm:$0xff]  ;;  %s3549_s9 = sld [smem:[#allocation41_spill]] (!%p2530_p1) }
 0xa79   : > { %v1704_v23 = vpop.xlane.xlu2 %1703  ;;  %v1566_v24 = vpop.xlane.xlu1 %1565 }
 0xa7a   : > { %v1705_v3 = vsub.f32 %v1700_v13, %v1704_v23  ;;  %2715 = vrcp.f32 %v1566_v24 }
 0xa7c   : > { %v2714_v25 = vpop.eup %2713  ;;  %v1706_v26 = vmul.f32 1.442695, %v1705_v3  ;;  %v2571_v3 = vld [vmem:[%s3126_s13 + $0x30] sm:$0xff] }
 0xa7d   : > { %v1636_v28 = vsel %vm1377_vm3, %v2714_v25, 0.0 }
 0xa7e   : > { %2717 = vpow2.f32 %v1706_v26  ;;  %1637 = vadd.xlane.f32.xlu0 %v1636_v28  ;;  %v2570_v26 = vld [vmem:[%s3126_s13 + $0x28] sm:$0xff]  ;;  %v2569_v28 = vld [vmem:[%s3126_s13 + $0x20] sm:$0xff] }
 0xa80   : > { %v2716_v31 = vpop.eup %2715 }
 0xa81   : > { %v2663_v29 = vpop.permute.xlu2 %2662  ;;  %v1776_v30 = vpop.xlane.xlu0 %1775  ;;  %v1568_v37 = vmul.f32 %v2716_v31, %v2712_v12  ;;  %v2568_v31 = vld [vmem:[%s3126_s13 + $0x18] sm:$0xff] }
 0xa82   : > { %v2664_v32 = vunpack.i.l.bf16 %v2663_v29  ;;  %v1777_v33 = vsub.f32 %v1772_v17, %v1776_v30  ;;  %v2665_v35 = vunpack.i.h.bf16 %v2663_v29 }
 0xa84   : > { %v2718_v34 = vpop.eup %2717  ;;  %v1778_v36 = vmul.f32 1.442695, %v1777_v33  ;;  %1592 = vmatpush.msra.mxu1 %v2664_v32 }
 0xa85   : > { %v1708_v38 = vsel %vm1377_vm3, %v2718_v34, 0.0 }
 0xa86   : > { %2719 = vpow2.f32 %v1778_v36  ;;  %1593 = vmatpush.msra.mxu1 %v2665_v35  ;;  %1709 = vadd.xlane.f32.xlu0 %v1708_v38 }
 0xa87   : > { %2467 = vmatmul.msk.f32.vlgmr.msra.gmra.mxu1 %vm1377_vm3, %v1568_v37 }
 0xa89   : > { %v2678_v42 = vpop.permute.xlu2 %2677 }
 0xa8a   : > { %v2679_v45 = vunpack.i.l.bf16 %v2678_v42  ;;  %v2680_v46 = vunpack.i.h.bf16 %v2678_v42 }
 0xa8c   : > { %v2720_v39 = vpop.eup %2719 }
 0xa8d   : > { %v1780_v40 = vsel %vm1377_vm3, %v2720_v39, 0.0 }
 0xa8e   : > { %1781 = vadd.xlane.f32.xlu0 %v1780_v40 }
 0xa91   : > { %v2668_v41 = vpop.permute.xlu1 %2667 }
 0xa92   : > { %v2669_v43 = vunpack.i.l.bf16 %v2668_v41  ;;  %v2670_v44 = vunpack.i.h.bf16 %v2668_v41 }
 0xa94   : > { %1664 = vmatpush.msrb.mxu0 %v2669_v43 }
 0xa96   : > { %1665 = vmatpush.msrb.mxu0 %v2670_v44  ;;  %v2566_v44 = vld [vmem:[%s3126_s13 + $0x8] sm:$0xff] }
 0xa98   : > { %1808 = vmatpush.msra.mxu0 %v2679_v45  ;;  %v2565_v45 = vld [vmem:[%s3126_s13] sm:$0xff] }
 0xa9a   : > { %1809 = vmatpush.msra.mxu0 %v2680_v46  ;;  %v2687_v46 = vld [vmem:[%s1037_s11] ss:$0 sm:$0xff] }
 0xaa2   : > { %2672 = vrot.lane.b32.xlu0 %v2661_v19, %s2835_s23 }
 0xaf1   : > { %v1638_v47 = vpop.xlane.xlu0 %1637 }
 0xaf2   : > { %2721 = vrcp.f32 %v1638_v47 }
 0xaf8   : > { %v2722_v48 = vpop.eup %2721 }
 0xaf9   : > { %v1640_v49 = vmul.f32 %v2722_v48, %v2714_v25  ;;  %v1710_v50 = vpop.xlane.xlu0 %1709 }
 0xafb   : > { %2471 = vmatmul.msk.f32.vlgmr.msrb.gmra.mxu0 %vm1377_vm3, %v1640_v49 }
 0xb01   : > { %v1782_v52 = vpop.xlane.xlu0 %1781 }
 0xb02   : > { %2723 = vrcp.f32 %v1782_v52 }
 0xb03   : > { %2725 = vrcp.f32 %v1710_v50 }
 0xb04   : > { %v1595_v62 = vpop.f32.mrf.mxu1 }
 0xb08   : > { %v2724_v53 = vpop.eup %2723 }
 0xb09   : > { %v1784_v54 = vmul.f32 %v2724_v53, %v2720_v39  ;;  %v2726_v56 = vpop.eup %2725  ;;  %v2686_v39 = vld [vmem:[%s3542_s7] ss:$0 sm:$0xff] }
 0xb0a   : > { %v1712_v59 = vmul.f32 %v2726_v56, %v2718_v34  ;;  %v2567_v34 = vld [vmem:[%s3126_s13 + $0x10] sm:$0xff]  ;;  %v2688_v53 = vld [vmem:[%s1045_s12] ss:$0 sm:$0xff] }
 0xb0b   : > { %2479 = vmatmul.msk.f32.vlgmr.msra.gmra.mxu0 %vm1377_vm3, %v1784_v54 }
 0xb14   : > { %v2673_v55 = vpop.permute.xlu0 %2672 }
 0xb15   : > { %v2674_v57 = vunpack.i.l.bf16 %v2673_v55  ;;  %v2675_v58 = vunpack.i.h.bf16 %v2673_v55 }
 0xb17   : > { %1736 = vmatpush.msrb.mxu1 %v2674_v57 }
 0xb19   : > { %1737 = vmatpush.msrb.mxu1 %v2675_v58 }
 0xb1a   : > { %2475 = vmatmul.msk.f32.vlgmr.msrb.gmra.mxu1 %vm1377_vm3, %v1712_v59 }
 0xb1b   : > { %1924 = vmatpush.bf16.msra.mxu1 %v2564_v21 }
 0xb1f   : > { %1925 = vmatpush.bf16.msra.mxu1 %v2563_v22 }
 0xb78   : > { %v1667_v60 = vpop.f32.mrf.mxu0 }
 0xb79   : > { %1815 = vrot.lane.b32.xlu1 %v1667_v60, %s2839_s24  ;;  %s3540_s24 = scalar_lea.vmem %s3539_s20, %s3041_s4 }
 0xb7a   : > { %v2685_v37 = vld [vmem:[%s3540_s24] ss:$0 sm:$0xff] }
 0xb88   : > { %v1811_v61 = vpop.f32.mrf.mxu0 }
 0xb89   : > { %1823 = vrot.lane.b32.xlu1 %v1811_v61, %s2840_s10 }
 0xb97   : > { %v1739_v63 = vpop.f32.mrf.mxu1 }
 0xb98   : > { %1819 = vrot.lane.b32.xlu2 %v1739_v63, %s2841_s2 }
 0xbeb   : > { %v1816_v2 = vpop.permute.xlu1 %1815 }
 0xbec   : > { %v1826_v5 = vsel %vm1107_vm2, %v1595_v62, %v1816_v2 }
 0xbf2   : > { %v1820_v4 = vpop.permute.xlu2 %1819 }
 0xbf3   : > { %v1827_v6 = vsel %vm1377_vm3, %v1826_v5, %v1820_v4 }
 0xbfb   : > { %v1824_v7 = vpop.permute.xlu1 %1823 }
 0xbfc   : > { %v1828_v8 = vsel %vm1379_vm4, %v1827_v6, %v1824_v7 }
 0xbfd   : > { %v1829_v9 = vpack.c.bf16 %v1828_v8, %v1828_v8 }
 0xbff   : > { %2488 = vmatmul.msk.bf16.vlgmr.msra.gmra.mxu2 %vm1082_vm1, %v1829_v9 }
 0xc82   : > { %v1857_v11 = vpop.f32.mrf.mxu2 }
 0xc83   : > { %v1858_v12 = vadd.f32 %v2684_v10, %v1857_v11  ;;  %v2689_v10 = vld [vmem:[%s1048_s18] ss:$0 sm:$0xff] }
 0xc85   : > { %v1863_v13 = vadd.f32 %v1858_v12, %v3257_v51  ;;  %v2572_v51 = vld [vmem:[%s3126_s13 + $0x38] sm:$0xff] }
 0xc86   : > { %2001 = vmatpush.bf16.msrb.mxu3 %v2572_v51 }
 0xc87   : > { %v1864_v14 = vsel %vm1082_vm1, %v1863_v13, 0.0 }
 0xc88   : > { %1865 = vadd.xlane.f32.xlu2 %v1864_v14 }
 0xc8a   : > { %v1859_v15 = vpop.f32.mrf.mxu2  ;;  %2002 = vmatpush.bf16.msrb.mxu3 %v2571_v3 }
 0xc8e   : > { %2003 = vmatpush.bf16.msrb.mxu3 %v2570_v26 }
 0xc92   : > { %2004 = vmatpush.bf16.msrb.mxu3 %v2569_v28 }
 0xc96   : > { %2005 = vmatpush.bf16.msrb.mxu3 %v2568_v31 }
 0xc9a   : > { %2006 = vmatpush.bf16.msrb.mxu3 %v2567_v34 }
 0xc9e   : > { %2007 = vmatpush.bf16.msrb.mxu3 %v2566_v44 }
 0xca2   : > { %2008 = vmatpush.bf16.msrb.mxu3 %v2565_v45 }
 0xcfb   : > { %v1866_v16 = vpop.xlane.xlu2 %1865 }
 0xcfc   : > { %v1867_v17 = vmul.f32 %v1866_v16, %v3222_v27 }
 0xcfe   : > { %v1868_v18 = vsub.f32 %v1863_v13, %v1867_v17 }
 0xd00   : > { %v1869_v19 = vmul.f32 %v1868_v18, %v1868_v18 }
 0xd02   : > { %v1870_v20 = vsel %vm1082_vm1, %v1869_v19, 0.0 }
 0xd03   : > { %1871 = vadd.xlane.f32.xlu0 %v1870_v20 }
 0xd76   : > { %v1872_v23 = vpop.xlane.xlu0 %1871 }
 0xd77   : > { %v1873_v24 = vmul.f32 %v1872_v23, %v3222_v27 }
 0xd79   : > { %v1874_v25 = vadd.f32 1e-05, %v1873_v24 }
 0xd7b   : > { %2727 = vrsqrt.f32 %v1874_v25  ;;  %vm1881_vm10 = vweird.f32 %v1874_v25 }
 0xd81   : > { %v2728_v29 = vpop.eup %2727 }
 0xd82   : > { %v1876_v30 = vmul.f32 %v2728_v29, %v1874_v25  ;;  %vm1882_vm9 = vweird.f32 %v2728_v29 }
 0xd83   : > { %vm1883_vm11 = vmor %vm1881_vm10, %vm1882_vm9 }
 0xd84   : > { %v1877_v32 = vmul.f32 %v2728_v29, %v1876_v30 }
 0xd86   : > { %v1878_v33 = vmul.f32 0.5, %v1877_v32 }
 0xd88   : > { %v1879_v35 = vsub.f32 1.5, %v1878_v33 }
 0xd8a   : > { %v1880_v36 = vmul.f32 %v2728_v29, %v1879_v35 }
 0xd8c   : > { %v1884_v38 = vsel %vm1883_vm11, %v2728_v29, %v1880_v36 }
 0xd8d   : > { %v1885_v40 = vmul.f32 %v1884_v38, %v1868_v18 }
 0xd8f   : > { %v1889_v41 = vmul.f32 %v2685_v37, %v1885_v40 }
 0xd91   : > { %v1893_v42 = vadd.f32 %v2686_v39, %v1889_v41 }
 0xd93   : > { %v1894_v43 = vpack.c.bf16 %v1893_v42, %v1893_v42 }
 0xd95   : > { %2497 = vmatmul.msk.bf16.vlgmr.msra.gmra.mxu1 %vm1082_vm1, %v1894_v43 }
 0xe12   : > { %v1927_v47 = vpop.f32.mrf.mxu1 }
 0xe13   : > { %v1928_v48 = vadd.f32 %v2687_v46, %v1927_v47 }
 0xe15   : > { %v1931_v49 = vmax.f32 %v1928_v48, 0.0 }
 0xe17   : > { %v1932_v50 = vpack.c.bf16 %v1931_v49, %v1931_v49 }
 0xe19   : > { %2009 = vmatmul.bf16.vlgmr.msrb.gmra.mxu3 %v1932_v50 }
 0xe1a   : > { %v1929_v52 = vpop.f32.mrf.mxu1 }
 0xe9c   : > { %v2010_v54 = vpop.f32.mrf.mxu3 }
 0xe9d   : > { %v2011_v55 = vadd.f32 %v2688_v53, %v2010_v54 }
 0xe9f   : > { %v2016_v56 = vadd.f32 %v2011_v55, %v1893_v42 }
 0xea1   : > { %v2017_v57 = vsel %vm1082_vm1, %v2016_v56, 0.0 }
 0xea2   : > { %2018 = vadd.xlane.f32.xlu1 %v2017_v57 }
 0xea4   : > { %v2012_v58 = vpop.f32.mrf.mxu3 }
 0xf15   : > { %v2019_v59 = vpop.xlane.xlu1 %2018 }
 0xf16   : > { %v2020_v60 = vmul.f32 %v2019_v59, %v3222_v27 }
 0xf18   : > { %v2021_v61 = vsub.f32 %v2016_v56, %v2020_v60 }
 0xf1a   : > { %v2022_v62 = vmul.f32 %v2021_v61, %v2021_v61 }
 0xf1c   : > { %v2023_v63 = vsel %vm1082_vm1, %v2022_v62, 0.0 }
 0xf1d   : > { %2024 = vadd.xlane.f32.xlu2 %v2023_v63 }
 0xf90   : > { %v2025_v0 = vpop.xlane.xlu2 %2024 }
 0xf91   : > { %v2026_v1 = vmul.f32 %v2025_v0, %v3222_v27  ;;  %v2690_v27 = vld [vmem:[%s1051_s14] ss:$0 sm:$0xff] }
 0xf93   : > { %v2027_v2 = vadd.f32 1e-05, %v2026_v1 }
 0xf95   : > { %2729 = vrsqrt.f32 %v2027_v2  ;;  %vm2034_vm13 = vweird.f32 %v2027_v2 }
 0xf9b   : > { %v2730_v4 = vpop.eup %2729 }
 0xf9c   : > { %v2029_v5 = vmul.f32 %v2730_v4, %v2027_v2  ;;  %vm2035_vm12 = vweird.f32 %v2730_v4 }
 0xf9d   : > { %vm2036_vm14 = vmor %vm2034_vm13, %vm2035_vm12 }
 0xf9e   : > { %v2030_v6 = vmul.f32 %v2730_v4, %v2029_v5 }
 0xfa0   : > { %v2031_v7 = vmul.f32 0.5, %v2030_v6 }
 0xfa2   : > { %v2032_v8 = vsub.f32 1.5, %v2031_v7 }
 0xfa4   : > { %v2033_v9 = vmul.f32 %v2730_v4, %v2032_v8 }
 0xfa6   : > { %v2037_v11 = vsel %vm2036_vm14, %v2730_v4, %v2033_v9 }
 0xfa7   : > { %v2038_v12 = vmul.f32 %v2037_v11, %v2021_v61 }
 0xfa9   : > { %v2042_v13 = vmul.f32 %v2689_v10, %v2038_v12  ;;  %2051 = sbr.rel (%p2530_p1) target bundleno = 4156 (0x103c), region = 120 }
 0xfab   : > { %v2046_v14 = vadd.f32 %v2690_v27, %v2042_v13 }
 0xfad   : > { %2047 = vst.msk [vmem:[#allocation2] sm:$0xff] %vm1082_vm1, %v2046_v14 }
 0xfae   : > { %v2574_v15 = vld [vmem:[%s3548_s3 + $0x8] sm:$0xff]  ;;  %v2573_v16 = vld [vmem:[%s3548_s3] sm:$0xff]  ;;  %v2052_v17 = vpack.c.bf16 %v2046_v14, %v2046_v14 }
 0xfaf   : > { %2082 = vmatpush.bf16.msra.mxu0 %v2574_v15  ;;  %v2731_v18 = vld [vmem:[%s3549_s9] ss:$0 sm:$0xff] }
 0xfb3   : > { %2083 = vmatpush.bf16.msra.mxu0 %v2573_v16 }
 0xfb6   : > { %2539 = vmatmul.msk.bf16.vlgmr.msra.gmra.mxu0 %vm1082_vm1, %v2052_v17 }
0x1033   : > { %v2085_v19 = vpop.f32.mrf.mxu0 }
0x1034   : > { %v2086_v20 = vadd.f32 %v2731_v18, %v2085_v19 }
0x1036   : > { %2089 = vst [vmem:[%s969_s30] sm:$0xff] %v2086_v20 }
0x103b   : > { %v2087_v21 = vpop.f32.mrf.mxu0 }
0x103c PF: > { %s3550_s23 = sld [smem:[#allocation10_spill]]  ;;  %s2103_s21 = sshll.u32 %s969_s30, 4  ;;  %s2104_s21 = int_to_ptr.vmem [resolvable:$true] %s2103_s21 }
0x103d   : > { %s3551_s20 = sld [smem:[#allocation7_spill]] }
0x103e   : > { %s3553_s7 = sld [smem:[#allocation42_spill]] }
0x1042   : > { %s2541_s10 = sshll.u32 %s3550_s23, 3 }
0x1043   : > { %s3554_s19 = sand.u32 1, %s3551_s20  }
0x1044   : > { %s2101_s5 = scalar_lea.hbm %s3553_s7, %s2541_s10  ;;  %s2091_s29 = scalar_lea.sflag [#allocation4], %s3554_s19 }
0x1045   : > { %s2105_s22 = sshll.u32 %s2101_s5, 4  ;;  %s2752_s17 = scalar_lea.hbm %s3553_s7, 16  ;;  %s2106_s22 = int_to_ptr.hbm [resolvable:$true] %s2105_s22 }
0x1046   : > { %s2746_s26 = sshra.s32 %s2106_s22, 4  ;;  %s2747_s26 = int_to_ptr.hbm [resolvable:$true] %s2746_s26 }
0x1047   : > { %s2748_s11 = scalar_lea.hbm %s2747_s26, 8  ;;  %p2753_p6 = scmp.lt.s32.totalorder %s2747_s26, %s3553_s7 }
0x1048   : > { %p2749_p2 = scmp.ne.s32.totalorder %s2747_s26, %s2748_s11  ;;  %p2754_p7 = scmp.lt.s32.totalorder %s2752_s17, %s2748_s11 }
0x104a   : > { %p2750_p4 = pnand %p2749_p2, %p3012_p3  ;;  %p2755_p8 = por %p2754_p7, %p2753_p6 }
0x104c   : > { %p2751_p5 = pneg %p2750_p4 }
0x104e   : > { %p2756_p10 = pnand %p2755_p8, %p2751_p5 }
0x1050   : > { %2759 = shalt.err (!%p2756_p10)
}
0x1051   : > { %2575 = dma.vmem_to_hbm [thread:$0]  (%p3012_p3), %s2104_s21, 128, %s2106_s22, %s2091_s29  }
0x1052 PF: > { %s3555_s1 = sld [smem:[#allocation13_spill]] }
0x1053   : > { %s3556_s30 = sld [smem:[#allocation6_spill]] }
0x1058   : > { %p2581_p11 = scmp.ge.s32.totalorder %s3555_s1, 2 }
0x1059   : > { %s2117_s15 = sand.u32 1, %s3556_s30  }
0x105a   : > { %p2578_p12 = pnand %p2581_p11, %p3022_p9  ;;  %s2118_s27 = scalar_lea.sflag [#allocation4], %s2117_s15 }
0x105c   : > { %p2579_p13 = pneg %p2578_p12 }
0x105e   : > { %2793 = dma.done.wait (%p2579_p13), %s2118_s27, 128  }
0x105f   : > { %2795 = vsyncadd (%p2579_p13), %s2118_s27, 4294967168  ;;  %s36_s2 = sadd.s32 1, %s3555_s1   ;;  %s3558_s4 = sld [smem:[#allocation7_spill]] }
0x1060   : > { %p33_p0 = scmp.ge.s32.totalorder %s36_s2, 6   ;;  %s3559_s30 = sld [smem:[#allocation8_spill]] }
0x1061   : > { %s3560_s24 = sld [smem:[#allocation18_spill]] }
0x1062   : > { %s3561_s25 = sld [smem:[#allocation11_spill]]  ;;  %35 = sbr.rel (!%p33_p0) target bundleno = 29 (0x1d), region = 215 }
0x1063   : > { %s3562_s5 = sld [smem:[#allocation12_spill]] }
0x1064   : > { %s3563_s1 = sld [smem:[#allocation14_spill]] }
0x1065   : > { %s3564_s26 = sld [smem:[#allocation16_spill]] }
0x1067   :  { %2124 = vsyncpa [#allocation4], 1 }
0x1068   :  { %2126 = vsyncpa [#allocation4 + $0x1], 1 }

</bundles_post_ra>
